<compile_context>
chip_gen: v7x
topology: tpu7x:2x2x1
jax: 0.10.0
libtpu: 0.0.40
codegen_flags: <defaults>
</compile_context>

<pallas_src>
import math

import jax
import jax.numpy as jnp
from jax.experimental import pallas as pl
from jax.experimental.pallas import tpu as pltpu

INPUT_DIM = 16
HIDDEN = 64
NUM_HEADS = 4
HEAD_DIM = HIDDEN // NUM_HEADS
LN_EPS = 1e-5


def _round_up(x, m):
    return ((x + m - 1) // m) * m


def _cdiv(a, b):
    return -(-a // b)


def _signal_fusion_kernel(
    rsi_ref, macd_ref, boll_ref,
    wr_ref, br_ref, wm_ref, bm_ref, wb_ref, bb_ref,
    wq_ref, bq_ref, wk_ref, bk_ref, wv_ref, bv_ref,
    wo_ref, bo_ref,
    g1_ref, be1_ref, g2_ref, be2_ref,
    wf1_ref, bf1_ref, wf2_ref, bf2_ref,
    wout_ref, bout_ref, hmask_ref,
    out_ref,
):
    f32 = jnp.float32
    bf16 = jnp.bfloat16

    def linear(x_bf, w_ref, b_ref):
        # bf16 operands, f32 accumulation on the MXU; bias add in f32.
        return jnp.dot(x_bf, w_ref[...], preferred_element_type=f32) + b_ref[...]

    # --- per-indicator projections, stacked along the sublane (batch) axis ---
    emb_rsi = linear(rsi_ref[...].astype(bf16), wr_ref, br_ref)
    emb_macd = linear(macd_ref[...].astype(bf16), wm_ref, bm_ref)
    emb_boll = linear(boll_ref[...].astype(bf16), wb_ref, bb_ref)
    tb = emb_rsi.shape[0]
    x = jnp.concatenate([emb_rsi, emb_macd, emb_boll], axis=0)        # (3*TB, H) f32

    # --- Q/K/V: three separate (H,H) matmuls -> natively 64-lane outputs,
    #     no cross-vreg lane slicing.  Query scale already folded into wq/bq. ---
    x_bf = x.astype(bf16)
    q = linear(x_bf, wq_ref, bq_ref)                                   # (3*TB, H)
    k = linear(x_bf, wk_ref, bk_ref)
    v = linear(x_bf, wv_ref, bv_ref)

    hmask = hmask_ref[...]                 # (H, H) block-diagonal ones (per head)
    v0, v1, v2 = v[0:tb], v[tb:2 * tb], v[2 * tb:3 * tb]

    # --- multi-head self-attention over the 3 indicators (seq len = 3) ---
    ctx_parts = []
    for i in range(3):
        qi = q[i * tb:(i + 1) * tb]                                    # (TB, H)
        qi3 = jnp.concatenate([qi, qi, qi], axis=0)                    # (3*TB, H)
        # ONE MXU matmul per query position: per-head q.k scores, already
        # lane-broadcast across each head's HEAD_DIM lanes.  Kept in f32 to
        # preserve softmax numerics.
        s_all = jnp.dot(qi3 * k, hmask, preferred_element_type=f32)    # (3*TB, H)
        s0, s1, s2 = s_all[0:tb], s_all[tb:2 * tb], s_all[2 * tb:3 * tb]
        m = jnp.maximum(jnp.maximum(s0, s1), s2)
        e0 = jnp.exp(s0 - m)
        e1 = jnp.exp(s1 - m)
        e2 = jnp.exp(s2 - m)
        inv = pl.reciprocal(e0 + e1 + e2, approx=True)
        ctx_parts.append((e0 * inv) * v0 + (e1 * inv) * v1 + (e2 * inv) * v2)

    ctx = jnp.concatenate(ctx_parts, axis=0)                           # (3*TB, H)
    attn_out = linear(ctx.astype(bf16), wo_ref, bo_ref)

    def layernorm(t, g_ref, b_ref):
        mu = jnp.mean(t, axis=-1, keepdims=True)
        d = t - mu
        var = jnp.mean(d * d, axis=-1, keepdims=True)
        return d * jax.lax.rsqrt(var + LN_EPS) * g_ref[...] + b_ref[...]

    # TODO(synk): dropout layers are identity here (inference / eval mode).
    out1 = layernorm(x + attn_out, g1_ref, be1_ref)
    hid = jnp.maximum(linear(out1.astype(bf16), wf1_ref, bf1_ref), 0.0)
    ffn = linear(hid.astype(bf16), wf2_ref, bf2_ref)
    out2 = layernorm(out1 + ffn, g2_ref, be2_ref)

    # --- mean over the 3 indicators, then the (H -> 1) output head ---
    fused = (out2[0:tb] + out2[tb:2 * tb] + out2[2 * tb:3 * tb]) * (1.0 / 3.0)
    out_ref[...] = (jnp.sum(fused * wout_ref[...], axis=-1, keepdims=True)
                    + bout_ref[...])


def _prepare_constants(params):
    """Fold the q-scale, split the fused QKV weight, cast weights to bf16."""
    (wr, br, wm, bm, wb, bb, wqkv, bqkv, wo, bo,
     g1, be1, g2, be2, wf1, bf1, wf2, bf2, wout, bout) = params
    bf16 = jnp.bfloat16
    scale = 1.0 / math.sqrt(HEAD_DIM)

    wq = wqkv[:, 0:HIDDEN] * scale
    wk = wqkv[:, HIDDEN:2 * HIDDEN]
    wv = wqkv[:, 2 * HIDDEN:3 * HIDDEN]
    bq = bqkv[:, 0:HIDDEN] * scale
    bk = bqkv[:, HIDDEN:2 * HIDDEN]
    bv = bqkv[:, 2 * HIDDEN:3 * HIDDEN]

    # Block-diagonal ones matrix: broadcasts each head's q.k score across lanes.
    hmask = jnp.kron(jnp.eye(NUM_HEADS, dtype=jnp.float32),
                     jnp.ones((HEAD_DIM, HEAD_DIM), jnp.float32))
    wout_row = jnp.transpose(wout)                                     # (1, H)

    return [
        wr.astype(bf16), br, wm.astype(bf16), bm, wb.astype(bf16), bb,
        wq.astype(bf16), bq, wk.astype(bf16), bk, wv.astype(bf16), bv,
        wo.astype(bf16), bo,
        g1, be1, g2, be2,
        wf1.astype(bf16), bf1, wf2.astype(bf16), bf2,
        wout_row, bout, hmask,
    ]


def signal_fusion(rsi, macd, bollinger, params, *, block_batch=1024):
    """params: see make_params(). Returns (B, 1) float32."""
    B, D = rsi.shape
    assert block_batch % 8 == 0 and block_batch >= 8

    # Batch tile: as large as allowed, but guarantee >= 2 grid steps whenever B
    # allows it (so the "parallel" axis can shard across both v7x TensorCores),
    # and minimize padding given the chosen step count.
    B8 = _round_up(B, 8)
    tb0 = min(block_batch, B8)
    if B8 >= 16:
        tb0 = min(tb0, _round_up(_cdiv(B8, 2), 8))
    steps = _cdiv(B8, tb0)
    TB = _round_up(_cdiv(B8, steps), 8)
    B_pad = TB * steps

    if B_pad != B:
        pad = ((0, B_pad - B), (0, 0))
        rsi = jnp.pad(rsi, pad)
        macd = jnp.pad(macd, pad)
        bollinger = jnp.pad(bollinger, pad)

    consts = _prepare_constants(params)

    batch_spec = lambda shape: pl.BlockSpec(shape, lambda i: (i, 0))
    const_spec = lambda shape: pl.BlockSpec(shape, lambda i: (0, 0))   # resident
    in_specs = [batch_spec((TB, D))] * 3 + [const_spec(c.shape) for c in consts]

    out = pl.pallas_call(
        _signal_fusion_kernel,
        out_shape=jax.ShapeDtypeStruct((B_pad, 1), jnp.float32),
        grid_spec=pltpu.PrefetchScalarGridSpec(
            num_scalar_prefetch=0,
            grid=(B_pad // TB,),
            in_specs=in_specs,
            out_specs=batch_spec((TB, 1)),
        ),
        compiler_params=pltpu.CompilerParams(
            dimension_semantics=("parallel",)),
    )(rsi, macd, bollinger, *consts)
    return out[:B]


def _xavier_uniform(key, fan_out, fan_in):
    limit = math.sqrt(6.0 / (fan_in + fan_out))
    # PyTorch weight shape is (out, in); we return the transposed (in, out) matrix.
    w = jax.random.uniform(key, (fan_out, fan_in), jnp.float32, -limit, limit)
    return jnp.transpose(w)


def make_params(key, input_dim=INPUT_DIM, hidden=HIDDEN):
    keys = jax.random.split(key, 8)
    h4 = hidden * 4

    def zb(n):
        return jnp.zeros((1, n), jnp.float32)

    params = [
        _xavier_uniform(keys[0], hidden, input_dim), zb(hidden),        # rsi_proj
        _xavier_uniform(keys[1], hidden, input_dim), zb(hidden),        # macd_proj
        _xavier_uniform(keys[2], hidden, input_dim), zb(hidden),        # bollinger_proj
        _xavier_uniform(keys[3], 3 * hidden, hidden), zb(3 * hidden),   # fused Wq|Wk|Wv
        _xavier_uniform(keys[4], hidden, hidden), zb(hidden),           # attn out_proj
        jnp.ones((1, hidden), jnp.float32), zb(hidden),                 # norm1 gamma/beta
        jnp.ones((1, hidden), jnp.float32), zb(hidden),                 # norm2 gamma/beta
        _xavier_uniform(keys[5], h4, hidden), zb(h4),                   # ffn.0
        _xavier_uniform(keys[6], hidden, h4), zb(hidden),               # ffn.3
        _xavier_uniform(keys[7], 1, hidden), zb(1),                     # output_layer (H,1)/(1,1)
    ]
    return params


def signal_fusion_reference(rsi, macd, bollinger, params):
    """Pure-JAX reference (same math as the PyTorch module in eval mode)."""
    (wr, br, wm, bm, wb, bb, wqkv, bqkv, wo, bo,
     g1, be1, g2, be2, wf1, bf1, wf2, bf2, wout, bout) = params
    hp = jax.lax.Precision.HIGHEST

    def lin(x, w, b):
        return jnp.dot(x, w, precision=hp) + b

    embs = jnp.stack([lin(rsi, wr, br), lin(macd, wm, bm),
                      lin(bollinger, wb, bb)], axis=0)                  # (3, B, H)
    qkv = lin(embs, wqkv, bqkv)                                         # (3, B, 3H)
    q, k, v = jnp.split(qkv, 3, axis=-1)
    B = rsi.shape[0]
    qh = q.reshape(3, B, NUM_HEADS, HEAD_DIM) / math.sqrt(HEAD_DIM)
    kh = k.reshape(3, B, NUM_HEADS, HEAD_DIM)
    vh = v.reshape(3, B, NUM_HEADS, HEAD_DIM)
    scores = jnp.einsum("ibhd,jbhd->bhij", qh, kh, precision=hp)
    p = jax.nn.softmax(scores, axis=-1)
    ctx = jnp.einsum("bhij,jbhd->ibhd", p, vh, precision=hp).reshape(3, B, HIDDEN)
    attn = lin(ctx, wo, bo)

    def ln(x, g, b):
        mu = jnp.mean(x, axis=-1, keepdims=True)
        var = jnp.mean((x - mu) ** 2, axis=-1, keepdims=True)
        return (x - mu) * jax.lax.rsqrt(var + LN_EPS) * g + b

    out1 = ln(embs + attn, g1, be1)
    ffn = lin(jnp.maximum(lin(out1, wf1, bf1), 0.0), wf2, bf2)
    out2 = ln(out1 + ffn, g2, be2)
    fused = jnp.mean(out2, axis=0)                                      # (B, H)
    return jnp.dot(fused, wout, precision=hp) + bout                    # (B, 1)


if __name__ == "__main__":
    key = jax.random.PRNGKey(0)
    k_rsi, k_macd, k_boll, k_params = jax.random.split(key, 4)

    # Small deterministic inputs; B deliberately not a multiple of the batch tile
    # so the padding + multi-step (>=2 grid steps) path is exercised.
    B = 12
    rsi = jax.random.normal(k_rsi, (B, INPUT_DIM), jnp.float32)
    macd = jax.random.normal(k_macd, (B, INPUT_DIM), jnp.float32)
    bollinger = jax.random.normal(k_boll, (B, INPUT_DIM), jnp.float32)

    params = make_params(k_params)

    out = signal_fusion(rsi, macd, bollinger, params)
    jax.block_until_ready(out)
    assert out.shape == (B, 1), out.shape

    ref = signal_fusion_reference(rsi, macd, bollinger, params)
    err = float(jnp.max(jnp.abs(out - ref)))
    # bf16 matmul operands + EUP approx reciprocal vs f32-HIGHEST reference.
    assert err < 5e-2, f"max abs err {err}"
    print("KERNEL_OK")
</pallas_src>

<mosaic_0001>
module attributes {stable_mosaic.version = 11 : i64} {
  func.func @_signal_fusion_kernel(%arg0: i32, %arg1: memref<8x16xf32, #tpu.memory_space<vmem>>, %arg2: memref<8x16xf32, #tpu.memory_space<vmem>>, %arg3: memref<8x16xf32, #tpu.memory_space<vmem>>, %arg4: memref<16x64xbf16, #tpu.memory_space<vmem>>, %arg5: memref<1x64xf32, #tpu.memory_space<vmem>>, %arg6: memref<16x64xbf16, #tpu.memory_space<vmem>>, %arg7: memref<1x64xf32, #tpu.memory_space<vmem>>, %arg8: memref<16x64xbf16, #tpu.memory_space<vmem>>, %arg9: memref<1x64xf32, #tpu.memory_space<vmem>>, %arg10: memref<64x64xbf16, #tpu.memory_space<vmem>>, %arg11: memref<1x64xf32, #tpu.memory_space<vmem>>, %arg12: memref<64x64xbf16, #tpu.memory_space<vmem>>, %arg13: memref<1x64xf32, #tpu.memory_space<vmem>>, %arg14: memref<64x64xbf16, #tpu.memory_space<vmem>>, %arg15: memref<1x64xf32, #tpu.memory_space<vmem>>, %arg16: memref<64x64xbf16, #tpu.memory_space<vmem>>, %arg17: memref<1x64xf32, #tpu.memory_space<vmem>>, %arg18: memref<1x64xf32, #tpu.memory_space<vmem>>, %arg19: memref<1x64xf32, #tpu.memory_space<vmem>>, %arg20: memref<1x64xf32, #tpu.memory_space<vmem>>, %arg21: memref<1x64xf32, #tpu.memory_space<vmem>>, %arg22: memref<64x256xbf16, #tpu.memory_space<vmem>>, %arg23: memref<1x256xf32, #tpu.memory_space<vmem>>, %arg24: memref<256x64xbf16, #tpu.memory_space<vmem>>, %arg25: memref<1x64xf32, #tpu.memory_space<vmem>>, %arg26: memref<1x64xf32, #tpu.memory_space<vmem>>, %arg27: memref<1x1xf32, #tpu.memory_space<vmem>>, %arg28: memref<64x64xf32, #tpu.memory_space<vmem>>, %arg29: memref<8x1xf32, #tpu.memory_space<vmem>>) attributes {dimension_semantics = [#tpu.dimension_semantics<parallel>], iteration_bounds = array<i64: 2>, scalar_prefetch = 0 : i64, scratch_operands = 0 : i64, tpu.core_type = #tpu.core_type<tc>, window_params = [{transform_indices = @transform_0, window_bounds = array<i64: 8, 16>}, {transform_indices = @transform_1, window_bounds = array<i64: 8, 16>}, {transform_indices = @transform_2, window_bounds = array<i64: 8, 16>}, {pipeline_mode = #tpu.pipeline_mode<synchronous>, transform_indices = @transform_3, window_bounds = array<i64: 16, 64>}, {pipeline_mode = #tpu.pipeline_mode<synchronous>, transform_indices = @transform_4, window_bounds = array<i64: 1, 64>}, {pipeline_mode = #tpu.pipeline_mode<synchronous>, transform_indices = @transform_5, window_bounds = array<i64: 16, 64>}, {pipeline_mode = #tpu.pipeline_mode<synchronous>, transform_indices = @transform_6, window_bounds = array<i64: 1, 64>}, {pipeline_mode = #tpu.pipeline_mode<synchronous>, transform_indices = @transform_7, window_bounds = array<i64: 16, 64>}, {pipeline_mode = #tpu.pipeline_mode<synchronous>, transform_indices = @transform_8, window_bounds = array<i64: 1, 64>}, {pipeline_mode = #tpu.pipeline_mode<synchronous>, transform_indices = @transform_9, window_bounds = array<i64: 64, 64>}, {pipeline_mode = #tpu.pipeline_mode<synchronous>, transform_indices = @transform_10, window_bounds = array<i64: 1, 64>}, {pipeline_mode = #tpu.pipeline_mode<synchronous>, transform_indices = @transform_11, window_bounds = array<i64: 64, 64>}, {pipeline_mode = #tpu.pipeline_mode<synchronous>, transform_indices = @transform_12, window_bounds = array<i64: 1, 64>}, {pipeline_mode = #tpu.pipeline_mode<synchronous>, transform_indices = @transform_13, window_bounds = array<i64: 64, 64>}, {pipeline_mode = #tpu.pipeline_mode<synchronous>, transform_indices = @transform_14, window_bounds = array<i64: 1, 64>}, {pipeline_mode = #tpu.pipeline_mode<synchronous>, transform_indices = @transform_15, window_bounds = array<i64: 64, 64>}, {pipeline_mode = #tpu.pipeline_mode<synchronous>, transform_indices = @transform_16, window_bounds = array<i64: 1, 64>}, {pipeline_mode = #tpu.pipeline_mode<synchronous>, transform_indices = @transform_17, window_bounds = array<i64: 1, 64>}, {pipeline_mode = #tpu.pipeline_mode<synchronous>, transform_indices = @transform_18, window_bounds = array<i64: 1, 64>}, {pipeline_mode = #tpu.pipeline_mode<synchronous>, transform_indices = @transform_19, window_bounds = array<i64: 1, 64>}, {pipeline_mode = #tpu.pipeline_mode<synchronous>, transform_indices = @transform_20, window_bounds = array<i64: 1, 64>}, {pipeline_mode = #tpu.pipeline_mode<synchronous>, transform_indices = @transform_21, window_bounds = array<i64: 64, 256>}, {pipeline_mode = #tpu.pipeline_mode<synchronous>, transform_indices = @transform_22, window_bounds = array<i64: 1, 256>}, {pipeline_mode = #tpu.pipeline_mode<synchronous>, transform_indices = @transform_23, window_bounds = array<i64: 256, 64>}, {pipeline_mode = #tpu.pipeline_mode<synchronous>, transform_indices = @transform_24, window_bounds = array<i64: 1, 64>}, {pipeline_mode = #tpu.pipeline_mode<synchronous>, transform_indices = @transform_25, window_bounds = array<i64: 1, 64>}, {pipeline_mode = #tpu.pipeline_mode<synchronous>, transform_indices = @transform_26, window_bounds = array<i64: 1, 1>}, {pipeline_mode = #tpu.pipeline_mode<synchronous>, transform_indices = @transform_27, window_bounds = array<i64: 64, 64>}, {transform_indices = @transform_28, window_bounds = array<i64: 8, 1>}]} {
    %c0 = arith.constant 0 : index
    %c0_0 = arith.constant 0 : index
    %0 = vector.load %arg1[%c0, %c0_0] : memref<8x16xf32, #tpu.memory_space<vmem>>, vector<8x16xf32>
    %1 = arith.truncf %0 : vector<8x16xf32> to vector<8x16xbf16>
    %c0_1 = arith.constant 0 : index
    %c0_2 = arith.constant 0 : index
    %2 = vector.load %arg4[%c0_1, %c0_2] : memref<16x64xbf16, #tpu.memory_space<vmem>>, vector<16x64xbf16>
    %cst = arith.constant dense<0.000000e+00> : vector<8x64xf32>
    %3 = tpu.matmul %1, %2, %cst {dimension_numbers = #tpu.dot_dimension_numbers<[1], [0], [0], [1], [0, 0, 1, 1], [], []>} : vector<8x16xbf16>, vector<16x64xbf16>, vector<8x64xf32> -> vector<8x64xf32>
    %c0_3 = arith.constant 0 : index
    %c0_4 = arith.constant 0 : index
    %4 = vector.load %arg5[%c0_3, %c0_4] : memref<1x64xf32, #tpu.memory_space<vmem>>, vector<1x64xf32>
    %5 = vector.broadcast %4 : vector<1x64xf32> to vector<8x64xf32>
    %6 = arith.addf %3, %5 : vector<8x64xf32>
    %c0_5 = arith.constant 0 : index
    %c0_6 = arith.constant 0 : index
    %7 = vector.load %arg2[%c0_5, %c0_6] : memref<8x16xf32, #tpu.memory_space<vmem>>, vector<8x16xf32>
    %8 = arith.truncf %7 : vector<8x16xf32> to vector<8x16xbf16>
    %c0_7 = arith.constant 0 : index
    %c0_8 = arith.constant 0 : index
    %9 = vector.load %arg6[%c0_7, %c0_8] : memref<16x64xbf16, #tpu.memory_space<vmem>>, vector<16x64xbf16>
    %cst_9 = arith.constant dense<0.000000e+00> : vector<8x64xf32>
    %10 = tpu.matmul %8, %9, %cst_9 {dimension_numbers = #tpu.dot_dimension_numbers<[1], [0], [0], [1], [0, 0, 1, 1], [], []>} : vector<8x16xbf16>, vector<16x64xbf16>, vector<8x64xf32> -> vector<8x64xf32>
    %c0_10 = arith.constant 0 : index
    %c0_11 = arith.constant 0 : index
    %11 = vector.load %arg7[%c0_10, %c0_11] : memref<1x64xf32, #tpu.memory_space<vmem>>, vector<1x64xf32>
    %12 = vector.broadcast %11 : vector<1x64xf32> to vector<8x64xf32>
    %13 = arith.addf %10, %12 : vector<8x64xf32>
    %c0_12 = arith.constant 0 : index
    %c0_13 = arith.constant 0 : index
    %14 = vector.load %arg3[%c0_12, %c0_13] : memref<8x16xf32, #tpu.memory_space<vmem>>, vector<8x16xf32>
    %15 = arith.truncf %14 : vector<8x16xf32> to vector<8x16xbf16>
    %c0_14 = arith.constant 0 : index
    %c0_15 = arith.constant 0 : index
    %16 = vector.load %arg8[%c0_14, %c0_15] : memref<16x64xbf16, #tpu.memory_space<vmem>>, vector<16x64xbf16>
    %cst_16 = arith.constant dense<0.000000e+00> : vector<8x64xf32>
    %17 = tpu.matmul %15, %16, %cst_16 {dimension_numbers = #tpu.dot_dimension_numbers<[1], [0], [0], [1], [0, 0, 1, 1], [], []>} : vector<8x16xbf16>, vector<16x64xbf16>, vector<8x64xf32> -> vector<8x64xf32>
    %c0_17 = arith.constant 0 : index
    %c0_18 = arith.constant 0 : index
    %18 = vector.load %arg9[%c0_17, %c0_18] : memref<1x64xf32, #tpu.memory_space<vmem>>, vector<1x64xf32>
    %19 = vector.broadcast %18 : vector<1x64xf32> to vector<8x64xf32>
    %20 = arith.addf %17, %19 : vector<8x64xf32>
    %21 = tpu.concatenate %6, %13, %20 in 0 : vector<8x64xf32>, vector<8x64xf32>, vector<8x64xf32> -> vector<24x64xf32>
    %22 = arith.truncf %21 : vector<24x64xf32> to vector<24x64xbf16>
    %c0_19 = arith.constant 0 : index
    %c0_20 = arith.constant 0 : index
    %23 = vector.load %arg10[%c0_19, %c0_20] : memref<64x64xbf16, #tpu.memory_space<vmem>>, vector<64x64xbf16>
    %cst_21 = arith.constant dense<0.000000e+00> : vector<24x64xf32>
    %24 = tpu.matmul %22, %23, %cst_21 {dimension_numbers = #tpu.dot_dimension_numbers<[1], [0], [0], [1], [0, 0, 1, 1], [], []>} : vector<24x64xbf16>, vector<64x64xbf16>, vector<24x64xf32> -> vector<24x64xf32>
    %c0_22 = arith.constant 0 : index
    %c0_23 = arith.constant 0 : index
    %25 = vector.load %arg11[%c0_22, %c0_23] : memref<1x64xf32, #tpu.memory_space<vmem>>, vector<1x64xf32>
    %26 = vector.broadcast %25 : vector<1x64xf32> to vector<24x64xf32>
    %27 = arith.addf %24, %26 : vector<24x64xf32>
    %c0_24 = arith.constant 0 : index
    %c0_25 = arith.constant 0 : index
    %28 = vector.load %arg12[%c0_24, %c0_25] : memref<64x64xbf16, #tpu.memory_space<vmem>>, vector<64x64xbf16>
    %cst_26 = arith.constant dense<0.000000e+00> : vector<24x64xf32>
    %29 = tpu.matmul %22, %28, %cst_26 {dimension_numbers = #tpu.dot_dimension_numbers<[1], [0], [0], [1], [0, 0, 1, 1], [], []>} : vector<24x64xbf16>, vector<64x64xbf16>, vector<24x64xf32> -> vector<24x64xf32>
    %c0_27 = arith.constant 0 : index
    %c0_28 = arith.constant 0 : index
    %30 = vector.load %arg13[%c0_27, %c0_28] : memref<1x64xf32, #tpu.memory_space<vmem>>, vector<1x64xf32>
    %31 = vector.broadcast %30 : vector<1x64xf32> to vector<24x64xf32>
    %32 = arith.addf %29, %31 : vector<24x64xf32>
    %c0_29 = arith.constant 0 : index
    %c0_30 = arith.constant 0 : index
    %33 = vector.load %arg14[%c0_29, %c0_30] : memref<64x64xbf16, #tpu.memory_space<vmem>>, vector<64x64xbf16>
    %cst_31 = arith.constant dense<0.000000e+00> : vector<24x64xf32>
    %34 = tpu.matmul %22, %33, %cst_31 {dimension_numbers = #tpu.dot_dimension_numbers<[1], [0], [0], [1], [0, 0, 1, 1], [], []>} : vector<24x64xbf16>, vector<64x64xbf16>, vector<24x64xf32> -> vector<24x64xf32>
    %c0_32 = arith.constant 0 : index
    %c0_33 = arith.constant 0 : index
    %35 = vector.load %arg15[%c0_32, %c0_33] : memref<1x64xf32, #tpu.memory_space<vmem>>, vector<1x64xf32>
    %36 = vector.broadcast %35 : vector<1x64xf32> to vector<24x64xf32>
    %37 = arith.addf %34, %36 : vector<24x64xf32>
    %c0_34 = arith.constant 0 : index
    %c0_35 = arith.constant 0 : index
    %38 = vector.load %arg28[%c0_34, %c0_35] : memref<64x64xf32, #tpu.memory_space<vmem>>, vector<64x64xf32>
    %39 = vector.extract_strided_slice %37 {offsets = [0, 0], sizes = [8, 64], strides = [1, 1]} : vector<24x64xf32> to vector<8x64xf32>
    %40 = vector.extract_strided_slice %37 {offsets = [8, 0], sizes = [8, 64], strides = [1, 1]} : vector<24x64xf32> to vector<8x64xf32>
    %41 = vector.extract_strided_slice %37 {offsets = [16, 0], sizes = [8, 64], strides = [1, 1]} : vector<24x64xf32> to vector<8x64xf32>
    %42 = vector.extract_strided_slice %27 {offsets = [0, 0], sizes = [8, 64], strides = [1, 1]} : vector<24x64xf32> to vector<8x64xf32>
    %43 = tpu.concatenate %42, %42, %42 in 0 : vector<8x64xf32>, vector<8x64xf32>, vector<8x64xf32> -> vector<24x64xf32>
    %44 = arith.mulf %43, %32 : vector<24x64xf32>
    %cst_36 = arith.constant dense<0.000000e+00> : vector<24x64xf32>
    %45 = tpu.matmul %44, %38, %cst_36 {dimension_numbers = #tpu.dot_dimension_numbers<[1], [0], [0], [1], [0, 0, 1, 1], [], []>} : vector<24x64xf32>, vector<64x64xf32>, vector<24x64xf32> -> vector<24x64xf32>
    %46 = vector.extract_strided_slice %45 {offsets = [0, 0], sizes = [8, 64], strides = [1, 1]} : vector<24x64xf32> to vector<8x64xf32>
    %47 = vector.extract_strided_slice %45 {offsets = [8, 0], sizes = [8, 64], strides = [1, 1]} : vector<24x64xf32> to vector<8x64xf32>
    %48 = vector.extract_strided_slice %45 {offsets = [16, 0], sizes = [8, 64], strides = [1, 1]} : vector<24x64xf32> to vector<8x64xf32>
    %49 = arith.maximumf %46, %47 : vector<8x64xf32>
    %50 = arith.maximumf %49, %48 : vector<8x64xf32>
    %51 = arith.subf %46, %50 : vector<8x64xf32>
    %52 = math.exp %51 : vector<8x64xf32>
    %53 = arith.subf %47, %50 : vector<8x64xf32>
    %54 = math.exp %53 : vector<8x64xf32>
    %55 = arith.subf %48, %50 : vector<8x64xf32>
    %56 = math.exp %55 : vector<8x64xf32>
    %57 = arith.addf %52, %54 : vector<8x64xf32>
    %58 = arith.addf %57, %56 : vector<8x64xf32>
    %59 = tpu.reciprocal %58 {approx = true} : vector<8x64xf32> -> vector<8x64xf32>
    %60 = arith.mulf %52, %59 : vector<8x64xf32>
    %61 = arith.mulf %60, %39 : vector<8x64xf32>
    %62 = arith.mulf %54, %59 : vector<8x64xf32>
    %63 = arith.mulf %62, %40 : vector<8x64xf32>
    %64 = arith.addf %61, %63 : vector<8x64xf32>
    %65 = arith.mulf %56, %59 : vector<8x64xf32>
    %66 = arith.mulf %65, %41 : vector<8x64xf32>
    %67 = arith.addf %64, %66 : vector<8x64xf32>
    %68 = vector.extract_strided_slice %27 {offsets = [8, 0], sizes = [8, 64], strides = [1, 1]} : vector<24x64xf32> to vector<8x64xf32>
    %69 = tpu.concatenate %68, %68, %68 in 0 : vector<8x64xf32>, vector<8x64xf32>, vector<8x64xf32> -> vector<24x64xf32>
    %70 = arith.mulf %69, %32 : vector<24x64xf32>
    %cst_37 = arith.constant dense<0.000000e+00> : vector<24x64xf32>
    %71 = tpu.matmul %70, %38, %cst_37 {dimension_numbers = #tpu.dot_dimension_numbers<[1], [0], [0], [1], [0, 0, 1, 1], [], []>} : vector<24x64xf32>, vector<64x64xf32>, vector<24x64xf32> -> vector<24x64xf32>
    %72 = vector.extract_strided_slice %71 {offsets = [0, 0], sizes = [8, 64], strides = [1, 1]} : vector<24x64xf32> to vector<8x64xf32>
    %73 = vector.extract_strided_slice %71 {offsets = [8, 0], sizes = [8, 64], strides = [1, 1]} : vector<24x64xf32> to vector<8x64xf32>
    %74 = vector.extract_strided_slice %71 {offsets = [16, 0], sizes = [8, 64], strides = [1, 1]} : vector<24x64xf32> to vector<8x64xf32>
    %75 = arith.maximumf %72, %73 : vector<8x64xf32>
    %76 = arith.maximumf %75, %74 : vector<8x64xf32>
    %77 = arith.subf %72, %76 : vector<8x64xf32>
    %78 = math.exp %77 : vector<8x64xf32>
    %79 = arith.subf %73, %76 : vector<8x64xf32>
    %80 = math.exp %79 : vector<8x64xf32>
    %81 = arith.subf %74, %76 : vector<8x64xf32>
    %82 = math.exp %81 : vector<8x64xf32>
    %83 = arith.addf %78, %80 : vector<8x64xf32>
    %84 = arith.addf %83, %82 : vector<8x64xf32>
    %85 = tpu.reciprocal %84 {approx = true} : vector<8x64xf32> -> vector<8x64xf32>
    %86 = arith.mulf %78, %85 : vector<8x64xf32>
    %87 = arith.mulf %86, %39 : vector<8x64xf32>
    %88 = arith.mulf %80, %85 : vector<8x64xf32>
    %89 = arith.mulf %88, %40 : vector<8x64xf32>
    %90 = arith.addf %87, %89 : vector<8x64xf32>
    %91 = arith.mulf %82, %85 : vector<8x64xf32>
    %92 = arith.mulf %91, %41 : vector<8x64xf32>
    %93 = arith.addf %90, %92 : vector<8x64xf32>
    %94 = vector.extract_strided_slice %27 {offsets = [16, 0], sizes = [8, 64], strides = [1, 1]} : vector<24x64xf32> to vector<8x64xf32>
    %95 = tpu.concatenate %94, %94, %94 in 0 : vector<8x64xf32>, vector<8x64xf32>, vector<8x64xf32> -> vector<24x64xf32>
    %96 = arith.mulf %95, %32 : vector<24x64xf32>
    %cst_38 = arith.constant dense<0.000000e+00> : vector<24x64xf32>
    %97 = tpu.matmul %96, %38, %cst_38 {dimension_numbers = #tpu.dot_dimension_numbers<[1], [0], [0], [1], [0, 0, 1, 1], [], []>} : vector<24x64xf32>, vector<64x64xf32>, vector<24x64xf32> -> vector<24x64xf32>
    %98 = vector.extract_strided_slice %97 {offsets = [0, 0], sizes = [8, 64], strides = [1, 1]} : vector<24x64xf32> to vector<8x64xf32>
    %99 = vector.extract_strided_slice %97 {offsets = [8, 0], sizes = [8, 64], strides = [1, 1]} : vector<24x64xf32> to vector<8x64xf32>
    %100 = vector.extract_strided_slice %97 {offsets = [16, 0], sizes = [8, 64], strides = [1, 1]} : vector<24x64xf32> to vector<8x64xf32>
    %101 = arith.maximumf %98, %99 : vector<8x64xf32>
    %102 = arith.maximumf %101, %100 : vector<8x64xf32>
    %103 = arith.subf %98, %102 : vector<8x64xf32>
    %104 = math.exp %103 : vector<8x64xf32>
    %105 = arith.subf %99, %102 : vector<8x64xf32>
    %106 = math.exp %105 : vector<8x64xf32>
    %107 = arith.subf %100, %102 : vector<8x64xf32>
    %108 = math.exp %107 : vector<8x64xf32>
    %109 = arith.addf %104, %106 : vector<8x64xf32>
    %110 = arith.addf %109, %108 : vector<8x64xf32>
    %111 = tpu.reciprocal %110 {approx = true} : vector<8x64xf32> -> vector<8x64xf32>
    %112 = arith.mulf %104, %111 : vector<8x64xf32>
    %113 = arith.mulf %112, %39 : vector<8x64xf32>
    %114 = arith.mulf %106, %111 : vector<8x64xf32>
    %115 = arith.mulf %114, %40 : vector<8x64xf32>
    %116 = arith.addf %113, %115 : vector<8x64xf32>
    %117 = arith.mulf %108, %111 : vector<8x64xf32>
    %118 = arith.mulf %117, %41 : vector<8x64xf32>
    %119 = arith.addf %116, %118 : vector<8x64xf32>
    %120 = tpu.concatenate %67, %93, %119 in 0 : vector<8x64xf32>, vector<8x64xf32>, vector<8x64xf32> -> vector<24x64xf32>
    %121 = arith.truncf %120 : vector<24x64xf32> to vector<24x64xbf16>
    %c0_39 = arith.constant 0 : index
    %c0_40 = arith.constant 0 : index
    %122 = vector.load %arg16[%c0_39, %c0_40] : memref<64x64xbf16, #tpu.memory_space<vmem>>, vector<64x64xbf16>
    %cst_41 = arith.constant dense<0.000000e+00> : vector<24x64xf32>
    %123 = tpu.matmul %121, %122, %cst_41 {dimension_numbers = #tpu.dot_dimension_numbers<[1], [0], [0], [1], [0, 0, 1, 1], [], []>} : vector<24x64xbf16>, vector<64x64xbf16>, vector<24x64xf32> -> vector<24x64xf32>
    %c0_42 = arith.constant 0 : index
    %c0_43 = arith.constant 0 : index
    %124 = vector.load %arg17[%c0_42, %c0_43] : memref<1x64xf32, #tpu.memory_space<vmem>>, vector<1x64xf32>
    %125 = vector.broadcast %124 : vector<1x64xf32> to vector<24x64xf32>
    %126 = arith.addf %123, %125 : vector<24x64xf32>
    %127 = arith.addf %21, %126 : vector<24x64xf32>
    %cst_44 = arith.constant dense<0.000000e+00> : vector<24xf32>
    %128 = vector.multi_reduction <add>, %127, %cst_44 [1] : vector<24x64xf32> to vector<24xf32>
    %129 = vector.shape_cast %128 : vector<24xf32> to vector<24x1xf32>
    %cst_45 = arith.constant 6.400000e+01 : f32
    %130 = vector.broadcast %cst_45 : f32 to vector<24x1xf32>
    %131 = arith.divf %129, %130 : vector<24x1xf32>
    %132 = vector.broadcast %131 : vector<24x1xf32> to vector<24x64xf32>
    %133 = arith.subf %127, %132 : vector<24x64xf32>
    %134 = arith.mulf %133, %133 : vector<24x64xf32>
    %cst_46 = arith.constant dense<0.000000e+00> : vector<24xf32>
    %135 = vector.multi_reduction <add>, %134, %cst_46 [1] : vector<24x64xf32> to vector<24xf32>
    %136 = vector.shape_cast %135 : vector<24xf32> to vector<24x1xf32>
    %cst_47 = arith.constant 6.400000e+01 : f32
    %137 = vector.broadcast %cst_47 : f32 to vector<24x1xf32>
    %138 = arith.divf %136, %137 : vector<24x1xf32>
    %cst_48 = arith.constant 9.99999974E-6 : f32
    %139 = vector.broadcast %cst_48 : f32 to vector<24x1xf32>
    %140 = arith.addf %138, %139 : vector<24x1xf32>
    %141 = math.rsqrt %140 : vector<24x1xf32>
    %142 = vector.broadcast %141 : vector<24x1xf32> to vector<24x64xf32>
    %143 = arith.mulf %133, %142 : vector<24x64xf32>
    %c0_49 = arith.constant 0 : index
    %c0_50 = arith.constant 0 : index
    %144 = vector.load %arg18[%c0_49, %c0_50] : memref<1x64xf32, #tpu.memory_space<vmem>>, vector<1x64xf32>
    %145 = vector.broadcast %144 : vector<1x64xf32> to vector<24x64xf32>
    %146 = arith.mulf %143, %145 : vector<24x64xf32>
    %c0_51 = arith.constant 0 : index
    %c0_52 = arith.constant 0 : index
    %147 = vector.load %arg19[%c0_51, %c0_52] : memref<1x64xf32, #tpu.memory_space<vmem>>, vector<1x64xf32>
    %148 = vector.broadcast %147 : vector<1x64xf32> to vector<24x64xf32>
    %149 = arith.addf %146, %148 : vector<24x64xf32>
    %150 = arith.truncf %149 : vector<24x64xf32> to vector<24x64xbf16>
    %c0_53 = arith.constant 0 : index
    %c0_54 = arith.constant 0 : index
    %151 = vector.load %arg22[%c0_53, %c0_54] : memref<64x256xbf16, #tpu.memory_space<vmem>>, vector<64x256xbf16>
    %cst_55 = arith.constant dense<0.000000e+00> : vector<24x256xf32>
    %152 = tpu.matmul %150, %151, %cst_55 {dimension_numbers = #tpu.dot_dimension_numbers<[1], [0], [0], [1], [0, 0, 1, 1], [], []>} : vector<24x64xbf16>, vector<64x256xbf16>, vector<24x256xf32> -> vector<24x256xf32>
    %c0_56 = arith.constant 0 : index
    %c0_57 = arith.constant 0 : index
    %153 = vector.load %arg23[%c0_56, %c0_57] : memref<1x256xf32, #tpu.memory_space<vmem>>, vector<1x256xf32>
    %154 = vector.broadcast %153 : vector<1x256xf32> to vector<24x256xf32>
    %155 = arith.addf %152, %154 : vector<24x256xf32>
    %cst_58 = arith.constant 0.000000e+00 : f32
    %156 = vector.broadcast %cst_58 : f32 to vector<24x256xf32>
    %157 = arith.maximumf %155, %156 : vector<24x256xf32>
    %158 = arith.truncf %157 : vector<24x256xf32> to vector<24x256xbf16>
    %c0_59 = arith.constant 0 : index
    %c0_60 = arith.constant 0 : index
    %159 = vector.load %arg24[%c0_59, %c0_60] : memref<256x64xbf16, #tpu.memory_space<vmem>>, vector<256x64xbf16>
    %cst_61 = arith.constant dense<0.000000e+00> : vector<24x64xf32>
    %160 = tpu.matmul %158, %159, %cst_61 {dimension_numbers = #tpu.dot_dimension_numbers<[1], [0], [0], [1], [0, 0, 1, 1], [], []>} : vector<24x256xbf16>, vector<256x64xbf16>, vector<24x64xf32> -> vector<24x64xf32>
    %c0_62 = arith.constant 0 : index
    %c0_63 = arith.constant 0 : index
    %161 = vector.load %arg25[%c0_62, %c0_63] : memref<1x64xf32, #tpu.memory_space<vmem>>, vector<1x64xf32>
    %162 = vector.broadcast %161 : vector<1x64xf32> to vector<24x64xf32>
    %163 = arith.addf %160, %162 : vector<24x64xf32>
    %164 = arith.addf %149, %163 : vector<24x64xf32>
    %cst_64 = arith.constant dense<0.000000e+00> : vector<24xf32>
    %165 = vector.multi_reduction <add>, %164, %cst_64 [1] : vector<24x64xf32> to vector<24xf32>
    %166 = vector.shape_cast %165 : vector<24xf32> to vector<24x1xf32>
    %cst_65 = arith.constant 6.400000e+01 : f32
    %167 = vector.broadcast %cst_65 : f32 to vector<24x1xf32>
    %168 = arith.divf %166, %167 : vector<24x1xf32>
    %169 = vector.broadcast %168 : vector<24x1xf32> to vector<24x64xf32>
    %170 = arith.subf %164, %169 : vector<24x64xf32>
    %171 = arith.mulf %170, %170 : vector<24x64xf32>
    %cst_66 = arith.constant dense<0.000000e+00> : vector<24xf32>
    %172 = vector.multi_reduction <add>, %171, %cst_66 [1] : vector<24x64xf32> to vector<24xf32>
    %173 = vector.shape_cast %172 : vector<24xf32> to vector<24x1xf32>
    %cst_67 = arith.constant 6.400000e+01 : f32
    %174 = vector.broadcast %cst_67 : f32 to vector<24x1xf32>
    %175 = arith.divf %173, %174 : vector<24x1xf32>
    %cst_68 = arith.constant 9.99999974E-6 : f32
    %176 = vector.broadcast %cst_68 : f32 to vector<24x1xf32>
    %177 = arith.addf %175, %176 : vector<24x1xf32>
    %178 = math.rsqrt %177 : vector<24x1xf32>
    %179 = vector.broadcast %178 : vector<24x1xf32> to vector<24x64xf32>
    %180 = arith.mulf %170, %179 : vector<24x64xf32>
    %c0_69 = arith.constant 0 : index
    %c0_70 = arith.constant 0 : index
    %181 = vector.load %arg20[%c0_69, %c0_70] : memref<1x64xf32, #tpu.memory_space<vmem>>, vector<1x64xf32>
    %182 = vector.broadcast %181 : vector<1x64xf32> to vector<24x64xf32>
    %183 = arith.mulf %180, %182 : vector<24x64xf32>
    %c0_71 = arith.constant 0 : index
    %c0_72 = arith.constant 0 : index
    %184 = vector.load %arg21[%c0_71, %c0_72] : memref<1x64xf32, #tpu.memory_space<vmem>>, vector<1x64xf32>
    %185 = vector.broadcast %184 : vector<1x64xf32> to vector<24x64xf32>
    %186 = arith.addf %183, %185 : vector<24x64xf32>
    %187 = vector.extract_strided_slice %186 {offsets = [0, 0], sizes = [8, 64], strides = [1, 1]} : vector<24x64xf32> to vector<8x64xf32>
    %188 = vector.extract_strided_slice %186 {offsets = [8, 0], sizes = [8, 64], strides = [1, 1]} : vector<24x64xf32> to vector<8x64xf32>
    %189 = arith.addf %187, %188 : vector<8x64xf32>
    %190 = vector.extract_strided_slice %186 {offsets = [16, 0], sizes = [8, 64], strides = [1, 1]} : vector<24x64xf32> to vector<8x64xf32>
    %191 = arith.addf %189, %190 : vector<8x64xf32>
    %cst_73 = arith.constant 0.333333343 : f32
    %192 = vector.broadcast %cst_73 : f32 to vector<8x64xf32>
    %193 = arith.mulf %191, %192 : vector<8x64xf32>
    %c0_74 = arith.constant 0 : index
    %c0_75 = arith.constant 0 : index
    %194 = vector.load %arg26[%c0_74, %c0_75] : memref<1x64xf32, #tpu.memory_space<vmem>>, vector<1x64xf32>
    %195 = vector.broadcast %194 : vector<1x64xf32> to vector<8x64xf32>
    %196 = arith.mulf %193, %195 : vector<8x64xf32>
    %cst_76 = arith.constant dense<0.000000e+00> : vector<8xf32>
    %197 = vector.multi_reduction <add>, %196, %cst_76 [1] : vector<8x64xf32> to vector<8xf32>
    %198 = vector.shape_cast %197 : vector<8xf32> to vector<8x1xf32>
    %c0_77 = arith.constant 0 : index
    %c0_78 = arith.constant 0 : index
    %199 = vector.load %arg27[%c0_77, %c0_78] : memref<1x1xf32, #tpu.memory_space<vmem>>, vector<1x1xf32>
    %200 = vector.broadcast %199 : vector<1x1xf32> to vector<8x1xf32>
    %201 = arith.addf %198, %200 : vector<8x1xf32>
    %c0_79 = arith.constant 0 : index
    %c0_80 = arith.constant 0 : index
    %202 = vector.load %arg29[%c0_79, %c0_80] : memref<8x1xf32, #tpu.memory_space<vmem>>, vector<8x1xf32>
    tpu.vector_store %arg29[%c0_79, %c0_80], %201 {strides = array<i32>} : memref<8x1xf32, #tpu.memory_space<vmem>>, vector<8x1xf32>,
    return
  }
  func.func @transform_0(%arg0: i32) -> (i32, i32) {
    %c0_i32 = arith.constant 0 : i32
    %c0_i32_0 = arith.constant 0 : i32
    return %arg0, %c0_i32 : i32, i32
  }
  func.func @transform_1(%arg0: i32) -> (i32, i32) {
    %c0_i32 = arith.constant 0 : i32
    %c0_i32_0 = arith.constant 0 : i32
    return %arg0, %c0_i32 : i32, i32
  }
  func.func @transform_2(%arg0: i32) -> (i32, i32) {
    %c0_i32 = arith.constant 0 : i32
    %c0_i32_0 = arith.constant 0 : i32
    return %arg0, %c0_i32 : i32, i32
  }
  func.func @transform_3(%arg0: i32) -> (i32, i32) {
    %c0_i32 = arith.constant 0 : i32
    %c0_i32_0 = arith.constant 0 : i32
    %c0_i32_1 = arith.constant 0 : i32
    return %c0_i32, %c0_i32_0 : i32, i32
  }
  func.func @transform_4(%arg0: i32) -> (i32, i32) {
    %c0_i32 = arith.constant 0 : i32
    %c0_i32_0 = arith.constant 0 : i32
    %c0_i32_1 = arith.constant 0 : i32
    return %c0_i32, %c0_i32_0 : i32, i32
  }
  func.func @transform_5(%arg0: i32) -> (i32, i32) {
    %c0_i32 = arith.constant 0 : i32
    %c0_i32_0 = arith.constant 0 : i32
    %c0_i32_1 = arith.constant 0 : i32
    return %c0_i32, %c0_i32_0 : i32, i32
  }
  func.func @transform_6(%arg0: i32) -> (i32, i32) {
    %c0_i32 = arith.constant 0 : i32
    %c0_i32_0 = arith.constant 0 : i32
    %c0_i32_1 = arith.constant 0 : i32
    return %c0_i32, %c0_i32_0 : i32, i32
  }
  func.func @transform_7(%arg0: i32) -> (i32, i32) {
    %c0_i32 = arith.constant 0 : i32
    %c0_i32_0 = arith.constant 0 : i32
    %c0_i32_1 = arith.constant 0 : i32
    return %c0_i32, %c0_i32_0 : i32, i32
  }
  func.func @transform_8(%arg0: i32) -> (i32, i32) {
    %c0_i32 = arith.constant 0 : i32
    %c0_i32_0 = arith.constant 0 : i32
    %c0_i32_1 = arith.constant 0 : i32
    return %c0_i32, %c0_i32_0 : i32, i32
  }
  func.func @transform_9(%arg0: i32) -> (i32, i32) {
    %c0_i32 = arith.constant 0 : i32
    %c0_i32_0 = arith.constant 0 : i32
    %c0_i32_1 = arith.constant 0 : i32
    return %c0_i32, %c0_i32_0 : i32, i32
  }
  func.func @transform_10(%arg0: i32) -> (i32, i32) {
    %c0_i32 = arith.constant 0 : i32
    %c0_i32_0 = arith.constant 0 : i32
    %c0_i32_1 = arith.constant 0 : i32
    return %c0_i32, %c0_i32_0 : i32, i32
  }
  func.func @transform_11(%arg0: i32) -> (i32, i32) {
    %c0_i32 = arith.constant 0 : i32
    %c0_i32_0 = arith.constant 0 : i32
    %c0_i32_1 = arith.constant 0 : i32
    return %c0_i32, %c0_i32_0 : i32, i32
  }
  func.func @transform_12(%arg0: i32) -> (i32, i32) {
    %c0_i32 = arith.constant 0 : i32
    %c0_i32_0 = arith.constant 0 : i32
    %c0_i32_1 = arith.constant 0 : i32
    return %c0_i32, %c0_i32_0 : i32, i32
  }
  func.func @transform_13(%arg0: i32) -> (i32, i32) {
    %c0_i32 = arith.constant 0 : i32
    %c0_i32_0 = arith.constant 0 : i32
    %c0_i32_1 = arith.constant 0 : i32
    return %c0_i32, %c0_i32_0 : i32, i32
  }
  func.func @transform_14(%arg0: i32) -> (i32, i32) {
    %c0_i32 = arith.constant 0 : i32
    %c0_i32_0 = arith.constant 0 : i32
    %c0_i32_1 = arith.constant 0 : i32
    return %c0_i32, %c0_i32_0 : i32, i32
  }
  func.func @transform_15(%arg0: i32) -> (i32, i32) {
    %c0_i32 = arith.constant 0 : i32
    %c0_i32_0 = arith.constant 0 : i32
    %c0_i32_1 = arith.constant 0 : i32
    return %c0_i32, %c0_i32_0 : i32, i32
  }
  func.func @transform_16(%arg0: i32) -> (i32, i32) {
    %c0_i32 = arith.constant 0 : i32
    %c0_i32_0 = arith.constant 0 : i32
    %c0_i32_1 = arith.constant 0 : i32
    return %c0_i32, %c0_i32_0 : i32, i32
  }
  func.func @transform_17(%arg0: i32) -> (i32, i32) {
    %c0_i32 = arith.constant 0 : i32
    %c0_i32_0 = arith.constant 0 : i32
    %c0_i32_1 = arith.constant 0 : i32
    return %c0_i32, %c0_i32_0 : i32, i32
  }
  func.func @transform_18(%arg0: i32) -> (i32, i32) {
    %c0_i32 = arith.constant 0 : i32
    %c0_i32_0 = arith.constant 0 : i32
    %c0_i32_1 = arith.constant 0 : i32
    return %c0_i32, %c0_i32_0 : i32, i32
  }
  func.func @transform_19(%arg0: i32) -> (i32, i32) {
    %c0_i32 = arith.constant 0 : i32
    %c0_i32_0 = arith.constant 0 : i32
    %c0_i32_1 = arith.constant 0 : i32
    return %c0_i32, %c0_i32_0 : i32, i32
  }
  func.func @transform_20(%arg0: i32) -> (i32, i32) {
    %c0_i32 = arith.constant 0 : i32
    %c0_i32_0 = arith.constant 0 : i32
    %c0_i32_1 = arith.constant 0 : i32
    return %c0_i32, %c0_i32_0 : i32, i32
  }
  func.func @transform_21(%arg0: i32) -> (i32, i32) {
    %c0_i32 = arith.constant 0 : i32
    %c0_i32_0 = arith.constant 0 : i32
    %c0_i32_1 = arith.constant 0 : i32
    return %c0_i32, %c0_i32_0 : i32, i32
  }
  func.func @transform_22(%arg0: i32) -> (i32, i32) {
    %c0_i32 = arith.constant 0 : i32
    %c0_i32_0 = arith.constant 0 : i32
    %c0_i32_1 = arith.constant 0 : i32
    return %c0_i32, %c0_i32_0 : i32, i32
  }
  func.func @transform_23(%arg0: i32) -> (i32, i32) {
    %c0_i32 = arith.constant 0 : i32
    %c0_i32_0 = arith.constant 0 : i32
    %c0_i32_1 = arith.constant 0 : i32
    return %c0_i32, %c0_i32_0 : i32, i32
  }
  func.func @transform_24(%arg0: i32) -> (i32, i32) {
    %c0_i32 = arith.constant 0 : i32
    %c0_i32_0 = arith.constant 0 : i32
    %c0_i32_1 = arith.constant 0 : i32
    return %c0_i32, %c0_i32_0 : i32, i32
  }
  func.func @transform_25(%arg0: i32) -> (i32, i32) {
    %c0_i32 = arith.constant 0 : i32
    %c0_i32_0 = arith.constant 0 : i32
    %c0_i32_1 = arith.constant 0 : i32
    return %c0_i32, %c0_i32_0 : i32, i32
  }
  func.func @transform_26(%arg0: i32) -> (i32, i32) {
    %c0_i32 = arith.constant 0 : i32
    %c0_i32_0 = arith.constant 0 : i32
    %c0_i32_1 = arith.constant 0 : i32
    return %c0_i32, %c0_i32_0 : i32, i32
  }
  func.func @transform_27(%arg0: i32) -> (i32, i32) {
    %c0_i32 = arith.constant 0 : i32
    %c0_i32_0 = arith.constant 0 : i32
    %c0_i32_1 = arith.constant 0 : i32
    return %c0_i32, %c0_i32_0 : i32, i32
  }
  func.func @transform_28(%arg0: i32) -> (i32, i32) {
    %c0_i32 = arith.constant 0 : i32
    %c0_i32_0 = arith.constant 0 : i32
    return %arg0, %c0_i32 : i32, i32
  }
}

</mosaic_0001>

<bundles_post_ra>
// kernel: tpu_custom_call.1
= control target key start
LH: loop header
LB: loop body
LE: loop exit
PB: predicated region body
PF: predicated region fallthrough
CT: control target
= control target key end

     0   :  { %s4815_s0 = inlined_call_operand.hbm [shape: f32[16,16], index: 0, kind: input, shape index: {}]   ;;  %s4816_s1 = inlined_call_operand.hbm [shape: f32[16,16], index: 1, kind: input, shape index: {}]   ;;  %s4817_s2 = inlined_call_operand.hbm [shape: f32[16,16], index: 2, kind: input, shape index: {}]   ;;  %s4818_s3 = inlined_call_operand.vmem [shape: bf16[16,64], index: 3, kind: input, shape index: {}]   ;;  %s4819_s4 = inlined_call_operand.hbm [shape: f32[1,64], index: 4, kind: input, shape index: {}]   ;;  %s4820_s5 = inlined_call_operand.vmem [shape: bf16[16,64], index: 5, kind: input, shape index: {}]   ;;  %s4821_s6 = inlined_call_operand.hbm [shape: f32[1,64], index: 6, kind: input, shape index: {}]   ;;  %s4822_s7 = inlined_call_operand.vmem [shape: bf16[16,64], index: 7, kind: input, shape index: {}]   ;;  %s4823_s8 = inlined_call_operand.hbm [shape: f32[1,64], index: 8, kind: input, shape index: {}]   ;;  %s4824_s9 = inlined_call_operand.vmem [shape: bf16[64,64], index: 9, kind: input, shape index: {}]   ;;  %s4825_s10 = inlined_call_operand.hbm [shape: f32[1,64], index: 10, kind: input, shape index: {}]   ;;  %s4826_s11 = inlined_call_operand.vmem [shape: bf16[64,64], index: 11, kind: input, shape index: {}]   ;;  %s4827_s12 = inlined_call_operand.hbm [shape: f32[1,64], index: 12, kind: input, shape index: {}]   ;;  %s4828_s13 = inlined_call_operand.hbm [shape: bf16[64,64], index: 13, kind: input, shape index: {}]   ;;  %s4829_s14 = inlined_call_operand.hbm [shape: f32[1,64], index: 14, kind: input, shape index: {}]   ;;  %s4830_s15 = inlined_call_operand.hbm [shape: bf16[64,64], index: 15, kind: input, shape index: {}]   ;;  %s4831_s16 = inlined_call_operand.hbm [shape: f32[1,64], index: 16, kind: input, shape index: {}]   ;;  %s4832_s17 = inlined_call_operand.hbm [shape: f32[1,64], index: 17, kind: input, shape index: {}]   ;;  %s4833_s18 = inlined_call_operand.hbm [shape: f32[1,64], index: 18, kind: input, shape index: {}]   ;;  %s4834_s19 = inlined_call_operand.hbm [shape: f32[1,64], index: 19, kind: input, shape index: {}]   ;;  %s4835_s20 = inlined_call_operand.hbm [shape: f32[1,64], index: 20, kind: input, shape index: {}]   ;;  %s4836_s21 = inlined_call_operand.vmem [shape: bf16[64,256], index: 21, kind: input, shape index: {}]   ;;  %s4837_s22 = inlined_call_operand.vmem [shape: f32[1,256], index: 22, kind: input, shape index: {}]   ;;  %s4838_s23 = inlined_call_operand.vmem [shape: bf16[256,64], index: 23, kind: input, shape index: {}]   ;;  %s4839_s24 = inlined_call_operand.vmem [shape: f32[1,64], index: 24, kind: input, shape index: {}]   ;;  %s4840_s25 = inlined_call_operand.vmem [shape: f32[1,64], index: 25, kind: input, shape index: {}]   ;;  %s4841_s26 = inlined_call_operand.<no memory space> [shape: f32[1,1], index: 26, kind: input, shape index: {}]   ;;  %s4842_s27 = inlined_call_operand.vmem [shape: f32[64,64], index: 27, kind: input, shape index: {}]   ;;  %s4843_s28 = inlined_call_operand.vmem [shape: f32[16,1], index: 28, kind: output, shape index: {}]  }
   0x1   :  { %4877 = sst [smem:[#allocation39_spill]] %s4815_s0  ;;  %v33_v0 = vstv %s4841_s26 }
   0x2   :  { %4878 = sst [smem:[#allocation40_spill]] %s4816_s1  ;;  %34 = vst [vmem:[#allocation2] sm:$0x1] %v33_v0 }
   0x3   :  { %4879 = sst [smem:[#allocation41_spill]] %s4817_s2 }
   0x4   :  { %4880 = sst [smem:[#allocation42_spill]] %s4818_s3 }
   0x5   :  { %4881 = sst [smem:[#allocation43_spill]] %s4819_s4 }
   0x6   :  { %4882 = sst [smem:[#allocation44_spill]] %s4820_s5 }
   0x7   :  { %4883 = sst [smem:[#allocation45_spill]] %s4821_s6 }
   0x8   :  { %4884 = sst [smem:[#allocation46_spill]] %s4822_s7 }
   0x9   :  { %4885 = sst [smem:[#allocation47_spill]] %s4823_s8 }
   0xa   :  { %4886 = sst [smem:[#allocation48_spill]] %s4824_s9 }
   0xb   :  { %4887 = sst [smem:[#allocation49_spill]] %s4825_s10 }
   0xc   :  { %4888 = sst [smem:[#allocation50_spill]] %s4826_s11 }
   0xd   :  { %4889 = sst [smem:[#allocation51_spill]] %s4827_s12 }
   0xe   :  { %4890 = sst [smem:[#allocation52_spill]] %s4829_s14 }
   0xf   :  { %4891 = sst [smem:[#allocation53_spill]] %s4831_s16 }
  0x10   :  { %4892 = sst [smem:[#allocation54_spill]] %s4833_s18 }
  0x11   :  { %4893 = sst [smem:[#allocation55_spill]] %s4836_s21 }
  0x12   :  { %4894 = sst [smem:[#allocation56_spill]] %s4837_s22 }
  0x13   :  { %4895 = sst [smem:[#allocation57_spill]] %s4838_s23 }
  0x14   :  { %4896 = sst [smem:[#allocation58_spill]] %s4839_s24 }
  0x15   :  { %4897 = sst [smem:[#allocation59_spill]] %s4840_s25 }
  0x16   :  { %4898 = sst [smem:[#allocation60_spill]] %s4842_s27 }
  0x17   :  { %4899 = sst [smem:[#allocation61_spill]] %s4843_s28 }
  0x18   :  { %35 = vsyncpa [#allocation4], 0 }
  0x19   :  { %37 = vsyncpa [#allocation4 + $0x1], 0 }
  0x1a   :  { %38 = vsyncpa [#allocation6], 0 }
  0x1b   :  { %40 = vsyncpa [#allocation6 + $0x1], 0 }
  0x1c   :  { %41 = vsyncpa [#allocation9], 0 }
  0x1d   :  { %42 = vsyncpa [#allocation12], 0 }
  0x1e   :  { %43 = vsyncpa [#allocation15], 0 }
  0x1f   :  { %44 = vsyncpa [#allocation18], 0 }
  0x20   :  { %45 = vsyncpa [#allocation21], 0 }
  0x21   :  { %46 = vsyncpa [#allocation24], 0 }
  0x22   :  { %47 = vsyncpa [#allocation27], 0  ;;  %s4041_s9 = smov 0   ;;  %s4043_s30 = smov 0  }
  0x23   :  { %s4045_s3 = smov 0   ;;  %s4047_s6 = smov 0  }
  0x24 LB: > { %s3871_s26 = smov [#allocation8]   ;;  %s4062_s0 = sadd.s32 4294967295, %s3869_s6   ;;  %s3869_s6 = sphi %s4047_s6, %s4955_s6   ;;  %s3865_s3 = sphi %s4045_s3, %s4959_s3   ;;  %s3861_s30 = sphi %s4043_s30, %s4958_s30   ;;  %s3857_s9 = sphi %s4041_s9, %s4957_s9  }
  0x25   : > { %s703_s10 = sshll.u32 %s3871_s26, 4  ;;  %p2692_p0 = scmp.ge.s32.totalorder %s3869_s6, 1  ;;  %s4067_s10 = int_to_ptr.vmem [resolvable:$true] %s703_s10 }
  0x26   : > { %p4858_p1 = scmp.eq.s32.totalorder %s4062_s0, 0  ;;  %p687_p2 = scmp.lt.s32.totalorder %s3869_s6, 3 }
  0x27   : > { %s3872_s29 = smov [#allocation11]   ;;  %s3873_s7 = smov [#allocation14]  }
  0x28   : > { %p4069_p3 = pnand %p2692_p0, %p687_p2  ;;  %s731_s2 = sshll.u32 %s3872_s29, 4  ;;  %s4075_s2 = int_to_ptr.vmem [resolvable:$true] %s731_s2 }
  0x29   : > { %s759_s12 = sshll.u32 %s3873_s7, 4  ;;  %s3874_s4 = smov [#allocation17]   ;;  %s4083_s12 = int_to_ptr.vmem [resolvable:$true] %s759_s12 }
  0x2a   : > { %s4900_s11 = scalar_select %p4069_p3, 1, 0 }
  0x2b   : > { %p3138_p4 = pneg %p4069_p3  ;;  %s4085_s8 = sshll.u32 %s3874_s4, 4  ;;  %s784_s8 = int_to_ptr.vmem [resolvable:$true] %s4085_s8 }
  0x2c   : > { %s4902_s28 = sld [smem:[#allocation43_spill]] }
  0x2d   : > { %p4079_p5 = pnand %p3138_p4, %p4858_p1 }
  0x2f   : > { %s4901_s1 = scalar_select %p4079_p5, 1, 0 }
  0x30   : > { %p4095_p7 = pneg %p4079_p5 }
  0x32   : > { %s3349_s25 = scalar_lea.hbm %s4902_s28, 16 }
  0x33   : > { %p3350_p6 = scmp.ne.s32.totalorder %s4902_s28, %s3349_s25  ;;  %p3356_p10 = scmp.lt.u32.totalorder %s3349_s25, %s4902_s28 }
  0x34   : > { %s4903_s7 = scalar_select %p4095_p7, 1, 0 }
  0x35   : > { %p3352_p8 = pnand %p4095_p7, %p3350_p6 }
  0x37   : > { %p3353_p9 = pneg %p3352_p8 }
  0x39   : > { %p3358_p11 = pnand %p3356_p10, %p3353_p9 }
  0x3b   : > { %3361 = shalt.err (!%p3358_p11)
}
  0x3c   : > { %s3362_s24 = scalar_lea.vmem %s4067_s10, 16  ;;  %s3369_s5 = scalar_lea.vmem %s4067_s10, 32 }
  0x3d   : > { %p3363_p12 = scmp.ne.s32.totalorder %s4067_s10, %s3362_s24  ;;  %p3370_p2 = scmp.lt.s32.totalorder %s4067_s10, %s4067_s10 }
  0x3e   : > { %p3371_p4 = scmp.lt.s32.totalorder %s3369_s5, %s3362_s24 }
  0x3f   : > { %p3365_p13 = pnand %p3363_p12, %p4095_p7 }
  0x40   : > { %p3372_p6 = por %p3371_p4, %p3370_p2 }
  0x41   : > { %p3366_p0 = pneg %p3365_p13 }
  0x43   : > { %p3373_p8 = pnand %p3372_p6, %p3366_p0 }
  0x45   : > { %3376 = shalt.err (!%p3373_p8)
}
  0x46   : > { %3141 = dma.hbm_to_vmem [thread:$0]  (!%p4079_p5), %s4902_s28, 16, %s4067_s10, [#allocation9]  }
  0x47   : > { %s4904_s4 = sld [smem:[#allocation47_spill]] }
  0x4d   : > { %s3377_s23 = scalar_lea.hbm %s4904_s4, 16 }
  0x4e   : > { %p3378_p9 = scmp.ne.s32.totalorder %s4904_s4, %s3377_s23  ;;  %p3384_p12 = scmp.lt.u32.totalorder %s3377_s23, %s4904_s4 }
  0x50   : > { %p3380_p10 = pnand %p3378_p9, %p4095_p7 }
  0x52   : > { %p3381_p11 = pneg %p3380_p10 }
  0x54   : > { %p3386_p13 = pnand %p3384_p12, %p3381_p11 }
  0x56   : > { %3389 = shalt.err (!%p3386_p13)
}
  0x57   : > { %s3390_s10 = scalar_lea.vmem %s4075_s2, 16  ;;  %s3397_s21 = scalar_lea.vmem %s4075_s2, 32 }
  0x58   : > { %p3391_p0 = scmp.ne.s32.totalorder %s4075_s2, %s3390_s10  ;;  %p3398_p6 = scmp.lt.s32.totalorder %s4075_s2, %s4075_s2 }
  0x59   : > { %p3399_p8 = scmp.lt.s32.totalorder %s3397_s21, %s3390_s10 }
  0x5a   : > { %p3393_p2 = pnand %p3391_p0, %p4095_p7 }
  0x5b   : > { %p3400_p9 = por %p3399_p8, %p3398_p6 }
  0x5c   : > { %p3394_p4 = pneg %p3393_p2 }
  0x5e   : > { %p3401_p10 = pnand %p3400_p9, %p3394_p4 }
  0x60   : > { %3404 = shalt.err (!%p3401_p10)
}
  0x61   : > { %3147 = dma.hbm_to_vmem [thread:$0]  (!%p4079_p5), %s4904_s4, 16, %s4075_s2, [#allocation12]  }
  0x62   : > { %s4905_s26 = sld [smem:[#allocation51_spill]] }
  0x68   : > { %s3405_s29 = scalar_lea.hbm %s4905_s26, 16 }
  0x69   : > { %p3406_p11 = scmp.ne.s32.totalorder %s4905_s26, %s3405_s29  ;;  %p3412_p0 = scmp.lt.u32.totalorder %s3405_s29, %s4905_s26 }
  0x6b   : > { %p3408_p12 = pnand %p3406_p11, %p4095_p7 }
  0x6d   : > { %p3409_p13 = pneg %p3408_p12 }
  0x6f   : > { %p3414_p2 = pnand %p3412_p0, %p3409_p13 }
  0x71   : > { %3417 = shalt.err (!%p3414_p2)
}
  0x72   : > { %s3418_s2 = scalar_lea.vmem %s4083_s12, 16  ;;  %s3425_s23 = scalar_lea.vmem %s4083_s12, 32 }
  0x73   : > { %p3419_p4 = scmp.ne.s32.totalorder %s4083_s12, %s3418_s2  ;;  %p3426_p9 = scmp.lt.s32.totalorder %s4083_s12, %s4083_s12 }
  0x74   : > { %p3427_p10 = scmp.lt.s32.totalorder %s3425_s23, %s3418_s2 }
  0x75   : > { %p3421_p6 = pnand %p3419_p4, %p4095_p7 }
  0x76   : > { %p3428_p11 = por %p3427_p10, %p3426_p9 }
  0x77   : > { %p3422_p8 = pneg %p3421_p6 }
  0x79   : > { %p3429_p12 = pnand %p3428_p11, %p3422_p8 }
  0x7b   : > { %3432 = shalt.err (!%p3429_p12)
}
  0x7c   : > { %3153 = dma.hbm_to_vmem [thread:$0]  (!%p4079_p5), %s4905_s26, 16, %s4083_s12, [#allocation15]  }
  0x7d   : > { %s3875_s25 = smov [#allocation20]   ;;  %s4906_s14 = sld [smem:[#allocation52_spill]] }
  0x7e   : > { %s807_s29 = sshll.u32 %s3875_s25, 4  ;;  %s808_s29 = int_to_ptr.vmem [resolvable:$true] %s807_s29 }
  0x83   : > { %s3433_s10 = scalar_lea.hbm %s4906_s14, 16 }
  0x84   : > { %p3434_p13 = scmp.ne.s32.totalorder %s4906_s14, %s3433_s10  ;;  %p3440_p4 = scmp.lt.u32.totalorder %s3433_s10, %s4906_s14 }
  0x86   : > { %p3436_p0 = pnand %p3434_p13, %p4095_p7 }
  0x88   : > { %p3437_p2 = pneg %p3436_p0 }
  0x8a   : > { %p3442_p6 = pnand %p3440_p4, %p3437_p2 }
  0x8c   : > { %3445 = shalt.err (!%p3442_p6)
}
  0x8d   : > { %s3446_s12 = scalar_lea.vmem %s784_s8, 16  ;;  %s3453_s27 = scalar_lea.vmem %s784_s8, 32 }
  0x8e   : > { %p3447_p8 = scmp.ne.s32.totalorder %s784_s8, %s3446_s12  ;;  %p3454_p11 = scmp.lt.s32.totalorder %s784_s8, %s784_s8 }
  0x8f   : > { %p3455_p12 = scmp.lt.s32.totalorder %s3453_s27, %s3446_s12 }
  0x90   : > { %p3449_p9 = pnand %p3447_p8, %p4095_p7 }
  0x91   : > { %p3456_p1 = por %p3455_p12, %p3454_p11 }
  0x92   : > { %p3450_p10 = pneg %p3449_p9 }
  0x94   : > { %p3457_p3 = pnand %p3456_p1, %p3450_p10 }
  0x96   : > { %3460 = shalt.err (!%p3457_p3)
}
  0x97   : > { %3159 = dma.hbm_to_vmem [thread:$0]  (!%p4079_p5), %s4906_s14, 16, %s784_s8, [#allocation18]  }
  0x98   : > { %s4907_s16 = sld [smem:[#allocation53_spill]] }
  0x9e   : > { %s3461_s5 = scalar_lea.hbm %s4907_s16, 16 }
  0x9f   : > { %p3462_p13 = scmp.ne.s32.totalorder %s4907_s16, %s3461_s5  ;;  %p3468_p3 = scmp.lt.u32.totalorder %s3461_s5, %s4907_s16 }
  0xa1   : > { %p3464_p0 = pnand %p3462_p13, %p4095_p7 }
  0xa3   : > { %p3465_p1 = pneg %p3464_p0 }
  0xa5   : > { %p3470_p2 = pnand %p3468_p3, %p3465_p1 }
  0xa7   : > { %3473 = shalt.err (!%p3470_p2)
}
  0xa8   : > { %s3474_s12 = scalar_lea.vmem %s808_s29, 16  ;;  %s3481_s8 = scalar_lea.vmem %s808_s29, 32 }
  0xa9   : > { %p3475_p4 = scmp.ne.s32.totalorder %s808_s29, %s3474_s12  ;;  %p3482_p9 = scmp.lt.s32.totalorder %s808_s29, %s808_s29 }
  0xaa   : > { %p3483_p10 = scmp.lt.s32.totalorder %s3481_s8, %s3474_s12 }
  0xab   : > { %p3477_p6 = pnand %p3475_p4, %p4095_p7 }
  0xac   : > { %p3484_p11 = por %p3483_p10, %p3482_p9 }
  0xad   : > { %p3478_p8 = pneg %p3477_p6 }
  0xaf   : > { %p3485_p12 = pnand %p3484_p11, %p3478_p8 }
  0xb1   : > { %3488 = shalt.err (!%p3485_p12)
}
  0xb2   : > { %3165 = dma.hbm_to_vmem [thread:$0]  (!%p4079_p5), %s4907_s16, 16, %s808_s29, [#allocation21]  }
  0xb3   : > { %s3876_s25 = smov [#allocation23]   ;;  %s4908_s18 = sld [smem:[#allocation54_spill]] }
  0xb4   : > { %s829_s4 = sshll.u32 %s3876_s25, 4  ;;  %s830_s4 = int_to_ptr.vmem [resolvable:$true] %s829_s4 }
  0xb9   : > { %s3489_s10 = scalar_lea.hbm %s4908_s18, 16 }
  0xba   : > { %p3490_p13 = scmp.ne.s32.totalorder %s4908_s18, %s3489_s10  ;;  %p3496_p3 = scmp.lt.u32.totalorder %s3489_s10, %s4908_s18 }
  0xbc   : > { %p3492_p0 = pnand %p3490_p13, %p4095_p7 }
  0xbe   : > { %p3493_p1 = pneg %p3492_p0 }
  0xc0   : > { %p3498_p2 = pnand %p3496_p3, %p3493_p1 }
  0xc2   : > { %3501 = shalt.err (!%p3498_p2)
}
  0xc3   : > { %s3502_s29 = scalar_lea.vmem %s830_s4, 16  ;;  %s3509_s8 = scalar_lea.vmem %s830_s4, 32 }
  0xc4   : > { %p3503_p4 = scmp.ne.s32.totalorder %s830_s4, %s3502_s29  ;;  %p3510_p9 = scmp.lt.s32.totalorder %s830_s4, %s830_s4 }
  0xc5   : > { %p3511_p10 = scmp.lt.s32.totalorder %s3509_s8, %s3502_s29 }
  0xc6   : > { %p3505_p6 = pnand %p3503_p4, %p4095_p7 }
  0xc7   : > { %p3512_p11 = por %p3511_p10, %p3510_p9 }
  0xc8   : > { %p3506_p8 = pneg %p3505_p6 }
  0xca   : > { %p3513_p12 = pnand %p3512_p11, %p3506_p8 }
  0xcc   : > { %3516 = shalt.err (!%p3513_p12)
}
  0xcd   : > { %3171 = dma.hbm_to_vmem [thread:$0]  (!%p4079_p5), %s4908_s18, 16, %s830_s4, [#allocation24]  }
  0xce   : > { %s4221_s25 = sadd.s32 1, %s3869_s6   ;;  %s60_s24 = sadd.s32 1, %s3865_s3 }
  0xcf   : > { %4909 = sst [smem:[#allocation37_spill]] %s4221_s25  ;;  %s57_s5 = ssub.s32 %s3869_s6, %s4221_s25 }
  0xd0   : > { %p67_p13 = scmp.ne.s32.totalorder %s3865_s3, %s3861_s30  ;;  %p58_p0 = scmp.eq.s32.totalorder %s57_s5, 0 }
  0xd1   : > { %p68_p1 = scmp.eq.s32.totalorder %s3869_s6, 0  ;;  %p73_p3 = scmp.ne.s32.totalorder %s3861_s30, %s3857_s9 }
  0xd2   : > { %p3201_p2 = scmp.lt.s32.totalorder %s3869_s6, 2  ;;  %p4911_p6 = scmp.eq.s32.totalorder %s4062_s0, 0 }
  0xd3   : > { %s4233_s10 = scalar_select %p58_p0, %s3865_s3, %s60_s24  }
  0xd4   : > { %p69_p4 = por %p68_p1, %p67_p13  ;;  %p4237_p8 = por %p4911_p6, %p73_p3 }
  0xd5   : > { %4910 = sst [smem:[#allocation38_spill]] %s4233_s10  ;;  %s4860_s4 = sand.u32 1, %s3865_s3  }
  0xd6   : > { %s4912_s21 = scalar_select %p4237_p8, 1, 0 }
  0xd7   : > { %s4243_s2 = sshll.u32 %s3869_s6, 7  ;;  %s4247_s23 = sshll.u32 %s4860_s4, 3 }
  0xd8   : > { %p4249_p9 = pnand %p3201_p2, %p69_p4  ;;  %s901_s9 = sand.u32 1, %s3869_s6  }
  0xd9   : > { %s4914_s27 = sld [smem:[#allocation40_spill]]  ;;  %s905_s24 = scalar_lea.vmem [#allocation5], %s4247_s23 }
  0xda   : > { %s4913_s12 = scalar_select %p4249_p9, 1, 0 }
  0xdb   : > { %s912_s5 = sshll.u32 %s905_s24, 4  ;;  %s4263_s4 = scalar_lea.sflag [#allocation6], %s901_s9  ;;  %s4261_s5 = int_to_ptr.vmem [resolvable:$true] %s912_s5 }
  0xdc   : > { %p4269_p11 = pneg %p4249_p9 }
  0xde   : > { %s4915_s6 = scalar_select %p4269_p11, 1, 0 }
  0xdf   : > { %s4258_s22 = scalar_lea.hbm %s4914_s27, %s4243_s2  ;;  %s3522_s16 = scalar_lea.hbm %s4914_s27, 256 }
  0xe0   : > { %s3517_s14 = scalar_lea.hbm %s4258_s22, 128  ;;  %p3523_p0 = scmp.lt.u32.totalorder %s4258_s22, %s4914_s27 }
  0xe1   : > { %p3518_p10 = scmp.ne.s32.totalorder %s4258_s22, %s3517_s14  ;;  %p3524_p1 = scmp.lt.u32.totalorder %s3522_s16, %s3517_s14 }
  0xe2   : > { %p3526_p2 = scmp.lt.u32.totalorder %s3517_s14, %s4258_s22 }
  0xe3   : > { %p3520_p12 = pnand %p4269_p11, %p3518_p10  ;;  %p3525_p3 = por %p3524_p1, %p3523_p0 }
  0xe5   : > { %p3521_p13 = pneg %p3520_p12  ;;  %p3527_p4 = por %p3526_p2, %p3525_p3 }
  0xe7   : > { %p3528_p6 = pnand %p3527_p4, %p3521_p13 }
  0xe9   : > { %3531 = shalt.err (!%p3528_p6)
}
  0xea   : > { %s3532_s9 = scalar_lea.vmem %s4261_s5, 128  ;;  %s3877_s29 = smov [#allocation5]  }
  0xeb   : > { %p3533_p10 = scmp.ne.s32.totalorder %s4261_s5, %s3532_s9  ;;  %s3537_s8 = sshll.u32 %s3877_s29, 4  ;;  %s3538_s8 = int_to_ptr.vmem [resolvable:$false] %s3537_s8 }
  0xec   : > { %s3539_s18 = scalar_lea.vmem %s3538_s8, 256  ;;  %p3540_p5 = scmp.lt.s32.totalorder %s4261_s5, %s3538_s8 }
  0xed   : > { %p3535_p12 = pnand %p3533_p10, %p4269_p11  ;;  %p3541_p7 = scmp.lt.s32.totalorder %s3539_s18, %s3532_s9 }
  0xef   : > { %p3536_p8 = pneg %p3535_p12  ;;  %p3542_p0 = por %p3541_p7, %p3540_p5 }
  0xf1   : > { %p3543_p1 = pnand %p3542_p0, %p3536_p8 }
  0xf3   : > { %3546 = shalt.err (!%p3543_p1)
}
  0xf4   : > { %3184 = dma.hbm_to_vmem [thread:$0]  (!%p4249_p9), %s4258_s22, 128, %s4261_s5, %s4263_s4  }
  0xf5   : > { %s3878_s14 = smov [#allocation10]   ;;  %s3879_s24 = smov [#allocation13]  }
  0xf6   : > { %s717_s16 = sshll.u32 %s3878_s14, 4  ;;  %s745_s26 = sshll.u32 %s3879_s24, 4  ;;  %s718_s16 = int_to_ptr.vmem [resolvable:$true] %s717_s16  ;;  %s746_s26 = int_to_ptr.vmem [resolvable:$true] %s745_s26 }
  0xf7   : > { %s4916_s28 = sld [smem:[#allocation45_spill]]  ;;  %p4917_p7 = scmp.ne.s32.totalorder %s4903_s7, 0 }
  0xfd   : > { %s3547_s8 = scalar_lea.hbm %s4916_s28, 16 }
  0xfe   : > { %p3548_p5 = scmp.ne.s32.totalorder %s4916_s28, %s3547_s8  ;;  %p3554_p3 = scmp.lt.u32.totalorder %s3547_s8, %s4916_s28 }
 0x100   : > { %p3550_p8 = pnand %p3548_p5, %p4917_p7 }
 0x102   : > { %p3551_p13 = pneg %p3550_p8 }
 0x104   : > { %p3556_p2 = pnand %p3554_p3, %p3551_p13 }
 0x106   : > { %3559 = shalt.err (!%p3556_p2)
}
 0x107   : > { %s3560_s22 = scalar_lea.vmem %s718_s16, 16  ;;  %s3567_s27 = scalar_lea.vmem %s718_s16, 32 }
 0x108   : > { %p3561_p4 = scmp.ne.s32.totalorder %s718_s16, %s3560_s22  ;;  %p3568_p12 = scmp.lt.s32.totalorder %s718_s16, %s718_s16 }
 0x109   : > { %p3569_p0 = scmp.lt.s32.totalorder %s3567_s27, %s3560_s22 }
 0x10a   : > { %p3563_p6 = pnand %p3561_p4, %p4917_p7 }
 0x10b   : > { %p3570_p1 = por %p3569_p0, %p3568_p12 }
 0x10c   : > { %p3564_p10 = pneg %p3563_p6 }
 0x10e   : > { %p3571_p9 = pnand %p3570_p1, %p3564_p10 }
 0x110   : > { %3574 = shalt.err (!%p3571_p9)
}
 0x111   : > { %p4918_p5 = scmp.ne.s32.totalorder %s4901_s1, 0  ;;  %s4919_s24 = sld [smem:[#allocation49_spill]] }
 0x113   : > { %3144 = dma.hbm_to_vmem [thread:$0]  (!%p4918_p5), %s4916_s28, 16, %s718_s16, [#allocation9]  }
 0x117   : > { %s3575_s29 = scalar_lea.hbm %s4919_s24, 16 }
 0x118   : > { %p3576_p8 = scmp.ne.s32.totalorder %s4919_s24, %s3575_s29  ;;  %p3582_p9 = scmp.lt.u32.totalorder %s3575_s29, %s4919_s24 }
 0x11a   : > { %p3578_p13 = pnand %p3576_p8, %p4917_p7 }
 0x11c   : > { %p3579_p3 = pneg %p3578_p13 }
 0x11e   : > { %p3584_p2 = pnand %p3582_p9, %p3579_p3 }
 0x120   : > { %3587 = shalt.err (!%p3584_p2)
}
 0x121   : > { %s3588_s27 = scalar_lea.vmem %s746_s26, 16  ;;  %s3595_s16 = scalar_lea.vmem %s746_s26, 32 }
 0x122   : > { %p3589_p4 = scmp.ne.s32.totalorder %s746_s26, %s3588_s27  ;;  %p3596_p12 = scmp.lt.s32.totalorder %s746_s26, %s746_s26 }
 0x123   : > { %p3597_p0 = scmp.lt.s32.totalorder %s3595_s16, %s3588_s27 }
 0x124   : > { %p3591_p6 = pnand %p3589_p4, %p4917_p7 }
 0x125   : > { %p3598_p1 = por %p3597_p0, %p3596_p12 }
 0x126   : > { %p3592_p10 = pneg %p3591_p6 }
 0x128   : > { %p3599_p11 = pnand %p3598_p1, %p3592_p10 }
 0x12a   : > { %3602 = shalt.err (!%p3599_p11)
}
 0x12b   : > { %3150 = dma.hbm_to_vmem [thread:$0]  (!%p4918_p5), %s4919_s24, 16, %s746_s26, [#allocation12]  }
 0x12c   : > { %s3880_s25 = smov [#allocation16]   ;;  %s3603_s9 = scalar_lea.hbm %s4828_s13, 512 }
 0x12d   : > { %s769_s10 = sshll.u32 %s3880_s25, 4  ;;  %p3604_p8 = scmp.ne.s32.totalorder %s4828_s13, %s3603_s9  ;;  %s770_s10 = int_to_ptr.vmem [resolvable:$true] %s769_s10 }
 0x12e   : > { %p3610_p3 = scmp.lt.u32.totalorder %s3603_s9, %s4828_s13 }
 0x12f   : > { %p3606_p11 = pnand %p3604_p8, %p4917_p7 }
 0x131   : > { %p3607_p13 = pneg %p3606_p11 }
 0x133   : > { %p3612_p9 = pnand %p3610_p3, %p3607_p13 }
 0x135   : > { %3615 = shalt.err (!%p3612_p9)
}
 0x136   : > { %s3616_s26 = scalar_lea.vmem %s770_s10, 512  ;;  %p3624_p10 = scmp.lt.s32.totalorder %s770_s10, %s770_s10 }
 0x137   : > { %p3617_p2 = scmp.ne.s32.totalorder %s770_s10, %s3616_s26  ;;  %p3625_p12 = scmp.lt.s32.totalorder %s3616_s26, %s3616_s26 }
 0x139   : > { %p3619_p4 = pnand %p3617_p2, %p4917_p7  ;;  %p3626_p0 = por %p3625_p12, %p3624_p10 }
 0x13b   : > { %p3620_p6 = pneg %p3619_p4 }
 0x13d   : > { %p3627_p1 = pnand %p3626_p0, %p3620_p6 }
 0x13f   : > { %3630 = shalt.err (!%p3627_p1)
}
 0x140   : > { %s3881_s5 = smov 64   ;;  %s3882_s14 = smov 4  }
 0x141   : > { %3156 = dma.hbm_to_vmem [thread:$0]  (!%p4918_p5), %s4828_s13, 512, %s770_s10, [#allocation15], %s3881_s5, %s3881_s5, %s3882_s14  }
 0x142   : > { %s3883_s8 = smov [#allocation19]   ;;  %s3884_s18 = smov [#allocation22]  }
 0x143   : > { %s793_s9 = sshll.u32 %s3883_s8, 4  ;;  %s818_s22 = sshll.u32 %s3884_s18, 4  ;;  %s794_s9 = int_to_ptr.vmem [resolvable:$true] %s793_s9  ;;  %s4347_s22 = int_to_ptr.vmem [resolvable:$true] %s818_s22 }
 0x144   : > { %s3631_s26 = scalar_lea.hbm %s4830_s15, 512 }
 0x145   : > { %p3632_p8 = scmp.ne.s32.totalorder %s4830_s15, %s3631_s26  ;;  %p3638_p3 = scmp.lt.u32.totalorder %s3631_s26, %s4830_s15 }
 0x147   : > { %p3634_p11 = pnand %p3632_p8, %p4917_p7 }
 0x149   : > { %p3635_p13 = pneg %p3634_p11 }
 0x14b   : > { %p3640_p9 = pnand %p3638_p3, %p3635_p13 }
 0x14d   : > { %3643 = shalt.err (!%p3640_p9)
}
 0x14e   : > { %s3644_s29 = scalar_lea.vmem %s794_s9, 512  ;;  %p3652_p10 = scmp.lt.s32.totalorder %s794_s9, %s794_s9 }
 0x14f   : > { %p3645_p2 = scmp.ne.s32.totalorder %s794_s9, %s3644_s29  ;;  %p3653_p12 = scmp.lt.s32.totalorder %s3644_s29, %s3644_s29 }
 0x151   : > { %p3647_p4 = pnand %p3645_p2, %p4917_p7  ;;  %p3654_p0 = por %p3653_p12, %p3652_p10 }
 0x153   : > { %p3648_p6 = pneg %p3647_p4 }
 0x155   : > { %p3655_p1 = pnand %p3654_p0, %p3648_p6 }
 0x157   : > { %3658 = shalt.err (!%p3655_p1)
}
 0x158   : > { %3162 = dma.hbm_to_vmem [thread:$0]  (!%p4918_p5), %s4830_s15, 512, %s794_s9, [#allocation18], %s3881_s5, %s3881_s5, %s3882_s14  }
 0x159   : > { %s3659_s27 = scalar_lea.hbm %s4832_s17, 16 }
 0x15a   : > { %p3660_p8 = scmp.ne.s32.totalorder %s4832_s17, %s3659_s27  ;;  %p3666_p3 = scmp.lt.u32.totalorder %s3659_s27, %s4832_s17 }
 0x15c   : > { %p3662_p11 = pnand %p3660_p8, %p4917_p7 }
 0x15e   : > { %p3663_p13 = pneg %p3662_p11 }
 0x160   : > { %p3668_p9 = pnand %p3666_p3, %p3663_p13 }
 0x162   : > { %3671 = shalt.err (!%p3668_p9)
}
 0x163   : > { %s3672_s5 = scalar_lea.vmem %s4347_s22, 16  ;;  %s3679_s14 = scalar_lea.vmem %s4347_s22, 32 }
 0x164   : > { %p3673_p2 = scmp.ne.s32.totalorder %s4347_s22, %s3672_s5  ;;  %p3680_p10 = scmp.lt.s32.totalorder %s4347_s22, %s4347_s22 }
 0x165   : > { %p3681_p12 = scmp.lt.s32.totalorder %s3679_s14, %s3672_s5 }
 0x166   : > { %p3675_p4 = pnand %p3673_p2, %p4917_p7 }
 0x167   : > { %p3682_p0 = por %p3681_p12, %p3680_p10 }
 0x168   : > { %p3676_p6 = pneg %p3675_p4 }
 0x16a   : > { %p3683_p1 = pnand %p3682_p0, %p3676_p6 }
 0x16c   : > { %3686 = shalt.err (!%p3683_p1)
}
 0x16d   : > { %3168 = dma.hbm_to_vmem [thread:$0]  (!%p4918_p5), %s4832_s17, 16, %s4347_s22, [#allocation21]  }
 0x16e   : > { %s3885_s28 = smov [#allocation25]   ;;  %s3886_s8 = smov [#allocation26]  }
 0x16f   : > { %s840_s24 = sshll.u32 %s3885_s28, 4  ;;  %s851_s18 = sshll.u32 %s3886_s8, 4  ;;  %s841_s24 = int_to_ptr.vmem [resolvable:$true] %s840_s24  ;;  %s4391_s18 = int_to_ptr.vmem [resolvable:$true] %s851_s18 }
 0x170   : > { %s3687_s26 = scalar_lea.hbm %s4834_s19, 16 }
 0x171   : > { %p3688_p8 = scmp.ne.s32.totalorder %s4834_s19, %s3687_s26  ;;  %p3694_p3 = scmp.lt.u32.totalorder %s3687_s26, %s4834_s19 }
 0x173   : > { %p3690_p11 = pnand %p3688_p8, %p4917_p7 }
 0x175   : > { %p3691_p13 = pneg %p3690_p11 }
 0x177   : > { %p3696_p9 = pnand %p3694_p3, %p3691_p13 }
 0x179   : > { %3699 = shalt.err (!%p3696_p9)
}
 0x17a   : > { %s3700_s14 = scalar_lea.vmem %s841_s24, 16  ;;  %s3707_s9 = scalar_lea.vmem %s841_s24, 32 }
 0x17b   : > { %p3701_p2 = scmp.ne.s32.totalorder %s841_s24, %s3700_s14  ;;  %p3708_p10 = scmp.lt.s32.totalorder %s841_s24, %s841_s24 }
 0x17c   : > { %p3709_p12 = scmp.lt.s32.totalorder %s3707_s9, %s3700_s14 }
 0x17d   : > { %p3703_p4 = pnand %p3701_p2, %p4917_p7 }
 0x17e   : > { %p3710_p0 = por %p3709_p12, %p3708_p10 }
 0x17f   : > { %p3704_p6 = pneg %p3703_p4 }
 0x181   : > { %p3711_p1 = pnand %p3710_p0, %p3704_p6 }
 0x183   : > { %3714 = shalt.err (!%p3711_p1)
}
 0x184   : > { %3174 = dma.hbm_to_vmem [thread:$0]  (!%p4918_p5), %s4834_s19, 16, %s841_s24, [#allocation24]  }
 0x185   : > { %s3715_s16 = scalar_lea.hbm %s4835_s20, 16 }
 0x186   : > { %p3716_p8 = scmp.ne.s32.totalorder %s4835_s20, %s3715_s16  ;;  %p3722_p3 = scmp.lt.u32.totalorder %s3715_s16, %s4835_s20 }
 0x188   : > { %p3718_p11 = pnand %p3716_p8, %p4917_p7 }
 0x18a   : > { %p3719_p13 = pneg %p3718_p11 }
 0x18c   : > { %p3724_p9 = pnand %p3722_p3, %p3719_p13 }
 0x18e   : > { %3727 = shalt.err (!%p3724_p9)
}
 0x18f   : > { %s3728_s24 = scalar_lea.vmem %s4391_s18, 16  ;;  %s3735_s22 = scalar_lea.vmem %s4391_s18, 32 }
 0x190   : > { %p3729_p2 = scmp.ne.s32.totalorder %s4391_s18, %s3728_s24  ;;  %p3736_p10 = scmp.lt.s32.totalorder %s4391_s18, %s4391_s18 }
 0x191   : > { %p3737_p12 = scmp.lt.s32.totalorder %s3735_s22, %s3728_s24 }
 0x192   : > { %p3731_p4 = pnand %p3729_p2, %p4917_p7 }
 0x193   : > { %p3738_p0 = por %p3737_p12, %p3736_p10 }
 0x194   : > { %p3732_p6 = pneg %p3731_p4 }
 0x196   : > { %p3739_p1 = pnand %p3738_p0, %p3732_p6 }
 0x198   : > { %3742 = shalt.err (!%p3739_p1)
}
 0x199   : > { %3177 = dma.hbm_to_vmem [thread:$0]  (!%p4918_p5), %s4835_s20, 16, %s4391_s18, [#allocation27]  }
 0x19a   : > { %s4920_s28 = sld [smem:[#allocation39_spill]]  ;;  %s887_s27 = scalar_lea.vmem [#allocation3], %s4247_s23 }
 0x19b   : > { %s894_s1 = sshll.u32 %s887_s27, 4  ;;  %s4921_s16 = sand.u32 1, %s3865_s3   ;;  %s895_s1 = int_to_ptr.vmem [resolvable:$true] %s894_s1 }
 0x19c   : > { %s884_s26 = scalar_lea.sflag [#allocation4], %s4921_s16  ;;  %p4922_p8 = scmp.ne.s32.totalorder %s4915_s6, 0 }
 0x1a0   : > { %s4439_s8 = scalar_lea.hbm %s4920_s28, %s4243_s2  ;;  %s3748_s5 = scalar_lea.hbm %s4920_s28, 256 }
 0x1a1   : > { %s3743_s25 = scalar_lea.hbm %s4439_s8, 128  ;;  %p3749_p5 = scmp.lt.u32.totalorder %s4439_s8, %s4920_s28 }
 0x1a2   : > { %p3744_p7 = scmp.ne.s32.totalorder %s4439_s8, %s3743_s25  ;;  %p3750_p3 = scmp.lt.u32.totalorder %s3748_s5, %s3743_s25 }
 0x1a3   : > { %p3752_p2 = scmp.lt.u32.totalorder %s3743_s25, %s4439_s8 }
 0x1a4   : > { %p3746_p11 = pnand %p3744_p7, %p4922_p8  ;;  %p3751_p9 = por %p3750_p3, %p3749_p5 }
 0x1a6   : > { %p3747_p13 = pneg %p3746_p11  ;;  %p3753_p4 = por %p3752_p2, %p3751_p9 }
 0x1a8   : > { %p3754_p6 = pnand %p3753_p4, %p3747_p13 }
 0x1aa   : > { %3757 = shalt.err (!%p3754_p6)
}
 0x1ab   : > { %s3758_s14 = scalar_lea.vmem %s895_s1, 128  ;;  %s3887_s9 = smov [#allocation3]  }
 0x1ac   : > { %p3759_p10 = scmp.ne.s32.totalorder %s895_s1, %s3758_s14  ;;  %s3763_s7 = sshll.u32 %s3887_s9, 4  ;;  %s3764_s7 = int_to_ptr.vmem [resolvable:$false] %s3763_s7 }
 0x1ad   : > { %s3765_s29 = scalar_lea.vmem %s3764_s7, 256  ;;  %p3766_p1 = scmp.lt.s32.totalorder %s895_s1, %s3764_s7 }
 0x1ae   : > { %p3761_p12 = pnand %p3759_p10, %p4922_p8  ;;  %p3767_p7 = scmp.lt.s32.totalorder %s3765_s29, %s3758_s14 }
 0x1b0   : > { %p3762_p0 = pneg %p3761_p12  ;;  %p3768_p11 = por %p3767_p7, %p3766_p1 }
 0x1b2   : > { %p3769_p3 = pnand %p3768_p11, %p3762_p0 }
 0x1b4   : > { %3772 = shalt.err (!%p3769_p3)
}
 0x1b5   : > { %p4923_p5 = scmp.ne.s32.totalorder %s4913_s12, 0  ;;  %s4924_s25 = sld [smem:[#allocation41_spill]] }
 0x1b6   : > { %s923_s10 = scalar_lea.vmem [#allocation7], %s4247_s23 }
 0x1b7   : > { %3181 = dma.hbm_to_vmem [thread:$0]  (!%p4923_p5), %s4439_s8, 128, %s895_s1, %s884_s26  }
 0x1b8   : > { %s930_s5 = sshll.u32 %s923_s10, 4  ;;  %s931_s5 = int_to_ptr.vmem [resolvable:$true] %s930_s5 }
 0x1bb   : > { %s4465_s18 = scalar_lea.hbm %s4924_s25, %s4243_s2  ;;  %s3778_s8 = scalar_lea.hbm %s4924_s25, 256 }
 0x1bc   : > { %s3773_s24 = scalar_lea.hbm %s4465_s18, 128  ;;  %p3779_p4 = scmp.lt.u32.totalorder %s4465_s18, %s4924_s25 }
 0x1bd   : > { %p3774_p13 = scmp.ne.s32.totalorder %s4465_s18, %s3773_s24  ;;  %p3780_p6 = scmp.lt.u32.totalorder %s3778_s8, %s3773_s24 }
 0x1be   : > { %p3782_p12 = scmp.lt.u32.totalorder %s3773_s24, %s4465_s18 }
 0x1bf   : > { %p3776_p9 = pnand %p3774_p13, %p4922_p8  ;;  %p3781_p10 = por %p3780_p6, %p3779_p4 }
 0x1c1   : > { %p3777_p2 = pneg %p3776_p9  ;;  %p3783_p0 = por %p3782_p12, %p3781_p10 }
 0x1c3   : > { %p3784_p1 = pnand %p3783_p0, %p3777_p2 }
 0x1c5   : > { %3787 = shalt.err (!%p3784_p1)
}
 0x1c6   : > { %s3788_s2 = scalar_lea.vmem %s931_s5, 128  ;;  %s3888_s23 = smov [#allocation7]  }
 0x1c7   : > { %p3789_p7 = scmp.ne.s32.totalorder %s931_s5, %s3788_s2  ;;  %s3793_s9 = sshll.u32 %s3888_s23, 4  ;;  %s3794_s9 = int_to_ptr.vmem [resolvable:$false] %s3793_s9 }
 0x1c8   : > { %s3795_s7 = scalar_lea.vmem %s3794_s9, 256  ;;  %p3796_p13 = scmp.lt.s32.totalorder %s931_s5, %s3794_s9 }
 0x1c9   : > { %p3791_p11 = pnand %p3789_p7, %p4922_p8  ;;  %p3797_p9 = scmp.lt.s32.totalorder %s3795_s7, %s3788_s2 }
 0x1cb   : > { %p3792_p3 = pneg %p3791_p11  ;;  %p3798_p5 = por %p3797_p9, %p3796_p13 }
 0x1cd   : > { %p3799_p4 = pnand %p3798_p5, %p3792_p3 }
 0x1cf   : > { %3802 = shalt.err (!%p3799_p4)
}
 0x1d0   : > { %p4925_p6 = scmp.ne.s32.totalorder %s4913_s12, 0  ;;  %p4926_p2 = scmp.ne.s32.totalorder %s4900_s11, 0 }
 0x1d1   : > { %s941_s6 = sand.u32 (!%p4926_p2), 1, %s3861_s30   ;;  %p4927_p8 = scmp.ne.s32.totalorder (!%p4926_p2), %s4912_s21, 0 }
 0x1d2   : > { %3187 = dma.hbm_to_vmem [thread:$0]  (!%p4925_p6), %s4465_s18, 128, %s931_s5, %s4263_s4  }
 0x1d3   : > { %939 = sbr.rel (%p4926_p2) target bundleno = 2698 (0xa8a), region = 132  ;;  %s4489_s29 = sshll.u32 (!%p4926_p2), %s941_s6, 3 }
 0x1d4   : > { %s942_s27 = scalar_lea.sflag (!%p4926_p2), [#allocation4], %s941_s6  ;;  %s945_s16 = scalar_lea.vmem (!%p4926_p2), [#allocation3], %s4489_s29 }
 0x1da   : > { %3820 = dma.done.wait (%p4927_p8), %s942_s27, 128  }
 0x1db   : > { %3822 = vsyncadd (%p4927_p8), %s942_s27, 4294967168  ;;  %s950_s4 = sand.u32 1, %s4062_s0   ;;  %s954_s11 = scalar_lea.vmem [#allocation5], %s4489_s29 }
 0x1dc   : > { %s951_s12 = scalar_lea.sflag [#allocation6], %s950_s4 }
 0x1dd   : > { %3824 = dma.done.wait (%p4927_p8), %s951_s12, 256  }
 0x1de   : > { %3826 = vsyncadd (%p4927_p8), %s951_s12, 4294967040  ;;  %s963_s18 = scalar_lea.vmem [#allocation7], %s4489_s29  ;;  %p4928_p5 = scmp.eq.s32.totalorder %s4062_s0, 0 }
 0x1e0   : > { %3828 = dma.done.wait (%p4928_p5), [#allocation9], 32   ;;  %p4929_p10 = pmov %p4928_p5 }
 0x1e1   : > { %p4930_p12 = pmov %p4928_p5 }
 0x1e2   : > { %3830 = vsyncadd (%p4929_p10), [#allocation9], 4294967264 }
 0x1e3   : > { %3832 = dma.done.wait (%p4930_p12), [#allocation12], 32   ;;  %p4931_p0 = pmov %p4928_p5 }
 0x1e5   : > { %3834 = vsyncadd (%p4931_p0), [#allocation12], 4294967264  ;;  %p4932_p1 = pmov %p4931_p0 }
 0x1e6   : > { %p4933_p7 = pmov %p4931_p0 }
 0x1e7   : > { %3836 = dma.done.wait (%p4932_p1), [#allocation15], 528  }
 0x1e8   : > { %3838 = vsyncadd (%p4933_p7), [#allocation15], 4294966768  ;;  %p4934_p11 = pmov %p4931_p0 }
 0x1e9   : > { %p4935_p3 = pmov %p4931_p0 }
 0x1ea   : > { %3840 = dma.done.wait (%p4934_p11), [#allocation18], 528  }
 0x1eb   : > { %3842 = vsyncadd (%p4935_p3), [#allocation18], 4294966768  ;;  %p4936_p13 = pmov %p4931_p0 }
 0x1ec   : > { %p4937_p9 = pmov %p4931_p0 }
 0x1ed   : > { %3844 = dma.done.wait (%p4936_p13), [#allocation21], 32  }
 0x1ee   : > { %3846 = vsyncadd (%p4937_p9), [#allocation21], 4294967264  ;;  %p4938_p4 = pmov %p4931_p0 }
 0x1ef   : > { %p4939_p6 = pmov %p4931_p0 }
 0x1f0   : > { %3848 = dma.done.wait (%p4938_p4), [#allocation24], 32  }
 0x1f1   : > { %3850 = vsyncadd (%p4939_p6), [#allocation24], 4294967264  ;;  %p4940_p2 = pmov %p4931_p0 }
 0x1f2   : > { %p4941_p8 = pmov %p4931_p0 }
 0x1f3   : > { %3852 = dma.done.wait (%p4940_p2), [#allocation27], 16  }
 0x1f4   : > { %3854 = vsyncadd (%p4941_p8), [#allocation27], 4294967280  ;;  %v3889_v1 = vmov 0.0   ;;  %vm3890_vm0 = vmmov 0   ;;  %s4942_s5 = sld [smem:[#allocation42_spill]]  ;;  %s4943_s14 = sld [smem:[#allocation44_spill]] }
 0x1f5   : > { %2903 = vmatprep.subr.bf16.mxu0 %v3889_v1  ;;  %2909 = vmatprep.subr.bf16.mxu1 %v3889_v1  ;;  %v1102_v4 = vld [vmem:[%s945_s16] sm:$0xff]  ;;  %vm1119_vm1 = vcmask 130048   ;;  %v1163_v5 = vld [vmem:[%s954_s11] sm:$0xff]  ;;  %s4944_s26 = sld [smem:[#allocation46_spill]]  ;;  %s4945_s9 = sld [smem:[#allocation48_spill]]  ;;  %vm1324_vm2 = vcmask 523264  }
 0x1f6   : > { %2905 = vmatprep.mubr.msk.bf16.mxu0 %vm3890_vm0, %v3889_v1  ;;  %2911 = vmatprep.mubr.msk.bf16.mxu1 %vm3890_vm0, %v3889_v1  ;;  %v1103_v6 = vpack.c.bf16 %v1102_v4, %v1102_v4  ;;  %v1164_v7 = vpack.c.bf16 %v1163_v5, %v1163_v5  ;;  %v3270_v10 = vld [vmem:[#allocation16] sm:$0xff]   ;;  %v3272_v14 = vld [vmem:[#allocation16 + $0x8] sm:$0xff]   ;;  %v3274_v16 = vld [vmem:[#allocation16 + $0x10] sm:$0xff]   ;;  %s4947_s21 = sld [smem:[#allocation50_spill]]  ;;  %s4948_s2 = sld [smem:[#allocation60_spill]]  ;;  %v3891_v48 = vmov 0.0|0.0  }
 0x1f7   : > { %v1223_v11 = vld [vmem:[%s963_s18] sm:$0xff]  ;;  %v3276_v18 = vld [vmem:[#allocation16 + $0x18] sm:$0xff]   ;;  %v2731_v20 = vld [vmem:[#allocation8] ss:$0 sm:$0xff]  ;;  %s4949_s1 = sld [smem:[#allocation55_spill]]  ;;  %s4950_s8 = sld [smem:[#allocation57_spill]] }
 0x1f8   : > { %v1224_v12 = vpack.c.bf16 %v1223_v11, %v1223_v11  ;;  %v2734_v21 = vld [vmem:[#allocation10] ss:$0 sm:$0xff]  ;;  %v2737_v33 = vld [vmem:[#allocation11] ss:$0 sm:$0xff]  ;;  %v2740_v0 = vld [vmem:[#allocation13] ss:$0 sm:$0xff] }
 0x1f9   : > { %s4952_s6 = sld [smem:[#allocation58_spill]]  ;;  %s4953_s16 = sld [smem:[#allocation59_spill]]  ;;  %vm2457_vm3 = vcmask 7168  }
 0x1fa   : > { %v3266_v2 = vld [vmem:[%s4942_s5] sm:$0xff]   ;;  %p1097_p5 = scmp.lt.s32.totalorder %s4062_s0, 1  ;;  %s4954_s18 = sld [smem:[#allocation61_spill]] }
 0x1fb   : > { %v3267_v3 = vld [vmem:[%s4943_s14] sm:$0xff]   ;;  %2904 = vmatpush3.bf16.msra.mxu0 %v3266_v2  ;;  %s4946_s7 = smov %s4945_s9  ;;  %v2747_v2 = vld [vmem:[#allocation14] ss:$0 sm:$0xff] }
 0x1fc   : > { %2910 = vmatpush3.bf16.msra.mxu1 %v3267_v3  ;;  %2915 = vmatprep.subr.bf16.mxu0 %v3889_v1  ;;  %v3268_v8 = vld [vmem:[%s4944_s26] sm:$0xff]   ;;  %v3271_v13 = vld [vmem:[%s4946_s7 + $0x8] sm:$0xff]   ;;  %v3273_v15 = vld [vmem:[%s4946_s7 + $0x10] sm:$0xff]   ;;  %s4951_s26 = sld [smem:[#allocation56_spill]]  ;;  %s4961_s0 = smov (!%p1097_p5, %s4062_s0), 1 }
 0x1fd   : > { %v3269_v9 = vld [vmem:[%s4945_s9] sm:$0xff]   ;;  %2945 = vmatprep.subr.bf16.mxu1 %v3270_v10  ;;  %v3275_v17 = vld [vmem:[%s4946_s7 + $0x18] sm:$0xff]   ;;  %v3278_v40 = vld [vmem:[%s4947_s21 + $0x8] sm:$0xff]   ;;  %s2730_s4 = sshll.u32 %s4961_s0, 3 }
 0x1fe   : > { %2906 = vmatmul.mubr.msk.bf16.vlgmr.msra.gmra.mrb[0].mxu0 %vm1119_vm1, %v1103_v6  ;;  %v3277_v19 = vld [vmem:[%s4947_s21] sm:$0xff]   ;;  %v3279_v41 = vld [vmem:[%s4947_s21 + $0x10] sm:$0xff]   ;;  %v3280_v42 = vld [vmem:[%s4947_s21 + $0x18] sm:$0xff]  }
 0x1ff   : > { %2912 = vmatmul.mubr.msk.bf16.vlgmr.msra.gmra.mrb[0].mxu1 %vm1119_vm1, %v1164_v7  ;;  %2916 = vmatpush3.bf16.msra.mxu0 %v3268_v8  ;;  %v1553_v43 = vld [vmem:[%s4948_s2] sm:$0xff]  ;;  %v1554_v44 = vld [vmem:[%s4948_s2 + $0x8] sm:$0xff]  ;;  %v1555_v46 = vld [vmem:[%s4948_s2 + $0x10] sm:$0xff] }
 0x200   : > { %2917 = vmatprep.mubr.msk.bf16.mxu0 %vm3890_vm0, %v3889_v1  ;;  %2921 = vmatprep.subr.bf16.mxu0 %v3269_v9  ;;  %v3045_v45 = vpack.c.bf16 %v1554_v44, %v1553_v43  ;;  %v1556_v47 = vld [vmem:[%s4948_s2 + $0x18] sm:$0xff]  ;;  %v1557_v50 = vld [vmem:[%s4948_s2 + $0x20] sm:$0xff]  ;;  %v1558_v51 = vld [vmem:[%s4948_s2 + $0x28] sm:$0xff]  ;;  %s1100_s10 = scalar_lea.vmem %s4954_s18, %s2730_s4 }
 0x201   : > { %2946 = vmatpush3.bf16.msra.mxu1 %v3270_v10  ;;  %v3048_v49 = vpack.c.bf16 %v1556_v47, %v1555_v46  ;;  %v3051_v52 = vpack.c.bf16 %v1558_v51, %v1557_v50  ;;  %v1559_v53 = vld [vmem:[%s4948_s2 + $0x30] sm:$0xff]  ;;  %v1560_v54 = vld [vmem:[%s4948_s2 + $0x38] sm:$0xff] }
 0x202   : > { %2947 = vmatprep.subr.bf16.mxu1 %v3272_v14  ;;  %v3054_v55 = vpack.c.bf16 %v1560_v54, %v1559_v53 }
 0x205   : > { %2948 = vmatpush3.bf16.msra.mxu1 %v3272_v14 }
 0x206   : > { %2918 = vmatmul.mubr.msk.bf16.vlgmr.msra.gmra.mrb[4].mxu0 %vm1119_vm1, %v1224_v12  ;;  %2949 = vmatprep.subr.bf16.mxu1 %v3274_v16 }
 0x207   : > { %2922 = vmatpush3.bf16.msra.mxu0 %v3269_v9 }
 0x208   : > { %2923 = vmatprep.subr.bf16.mxu0 %v3271_v13 }
 0x209   : > { %2950 = vmatpush3.bf16.msra.mxu1 %v3274_v16 }
 0x20a   : > { %2951 = vmatprep.subr.bf16.mxu1 %v3276_v18 }
 0x20b   : > { %2924 = vmatpush3.bf16.msra.mxu0 %v3271_v13 }
 0x20c   : > { %2925 = vmatprep.subr.bf16.mxu0 %v3273_v15 }
 0x20d   : > { %2952 = vmatpush3.bf16.msra.mxu1 %v3276_v18 }
 0x20e   : > { %3056 = vmatprep.subr.bf16.mxu1 %v3891_v48 }
 0x20f   : > { %2926 = vmatpush3.bf16.msra.mxu0 %v3273_v15 }
 0x210   : > { %2927 = vmatprep.subr.bf16.mxu0 %v3275_v17 }
 0x213   : > { %2928 = vmatpush3.bf16.msra.mxu0 %v3275_v17 }
 0x214   : > { %2933 = vmatprep.subr.bf16.mxu0 %v3277_v19 }
 0x2d1   : > { %v1157_v22 = vpop.f32.mrb[0].mxu0 }
 0x2d2   : > { %v4571_v23 = vadd.f32 %v2731_v20, %v1157_v22  ;;  %v2907_v24 = vpop.f32.mrb[1].mxu0  ;;  %v1217_v25 = vpop.f32.mrb[0].mxu1  ;;  %v3281_v22 = vld [vmem:[#allocation19] sm:$0xff]  }
 0x2d3   : > { %v4573_v26 = vadd.f32 %v2734_v21, %v1217_v25  ;;  %v1160_v27 = vpop.f32.mrb[2].mxu0  ;;  %v2913_v28 = vpop.f32.mrb[1].mxu1  ;;  %v3282_v24 = vld [vmem:[#allocation19 + $0x8] sm:$0xff]   ;;  %v3283_v25 = vld [vmem:[#allocation19 + $0x10] sm:$0xff]  }
 0x2d4   : > { %v2908_v29 = vpop.f32.mrb[3].mxu0  ;;  %v1220_v30 = vpop.f32.mrb[2].mxu1  ;;  %v3284_v27 = vld [vmem:[#allocation19 + $0x18] sm:$0xff]  }
 0x2d5   : > { %v1283_v31 = vpack.c.bf16 %v4573_v26, %v4571_v23  ;;  %v2914_v32 = vpop.f32.mrb[3].mxu1 }
 0x2d7   : > { %2929 = vmatprep.mubr.msk.bf16.mxu0 %vm1324_vm2, %v1283_v31  ;;  %2953 = vmatprep.mubr.msk.bf16.mxu1 %vm1324_vm2, %v1283_v31 }
 0x2d9   : > { %v1277_v34 = vpop.f32.mrb[4].mxu0 }
 0x2da   : > { %v4579_v35 = vadd.f32 %v2737_v33, %v1277_v34  ;;  %v2919_v36 = vpop.f32.mrb[5].mxu0 }
 0x2db   : > { %v1280_v37 = vpop.f32.mrb[6].mxu0 }
 0x2dc   : > { %v1284_v38 = vpack.c.bf16 %v4579_v35, %v4579_v35  ;;  %v2920_v39 = vpop.f32.mrb[7].mxu0 }
 0x2de   : > { %2930 = vmatmul.mubr.msk.bf16.vlgmr.msra.gmra.mrb[8].mxu0 %vm1324_vm2, %v1284_v38  ;;  %2954 = vmatmul.mubr.msk.bf16.vlgmr.msra.gmra.mrb[4].mxu1 %vm1324_vm2, %v1284_v38 }
 0x2df   : > { %2934 = vmatpush3.bf16.msra.mxu0 %v3277_v19  ;;  %2941 = vmatprep.mubr.msk.bf16.mxu0 %vm1324_vm2, %v1283_v31 }
 0x2e0   : > { %2935 = vmatprep.subr.bf16.mxu0 %v3278_v40  ;;  %2998 = vmatprep.mubr.msk.f32.mxu1 %vm3890_vm0, %v3889_v1 }
 0x2e1   : > { %3058 = vmatpush3.bf16.msra.mxu1 %v3045_v45 }
 0x2e2   : > { %3059 = vmatprep.subr.bf16.mxu1 %v3891_v48 }
 0x2e3   : > { %2936 = vmatpush3.bf16.msra.mxu0 %v3278_v40 }
 0x2e4   : > { %2937 = vmatprep.subr.bf16.mxu0 %v3279_v41 }
 0x2e5   : > { %3061 = vmatpush3.bf16.msra.mxu1 %v3048_v49 }
 0x2e6   : > { %3062 = vmatprep.subr.bf16.mxu1 %v3891_v48 }
 0x2e7   : > { %2938 = vmatpush3.bf16.msra.mxu0 %v3279_v41 }
 0x2e8   : > { %2939 = vmatprep.subr.bf16.mxu0 %v3280_v42 }
 0x2e9   : > { %3064 = vmatpush3.bf16.msra.mxu1 %v3051_v52 }
 0x2ea   : > { %3065 = vmatprep.subr.bf16.mxu1 %v3891_v48 }
 0x2eb   : > { %2940 = vmatpush3.bf16.msra.mxu0 %v3280_v42 }
 0x2ec   : > { %3044 = vmatprep.subr.bf16.mxu0 %v3891_v48 }
 0x2ed   : > { %3067 = vmatpush3.bf16.msra.mxu1 %v3054_v55 }
 0x2ee   : > { %2942 = vmatmul.mubr.msk.bf16.vlgmr.msra.gmra.mrb[12].mxu0 %vm1324_vm2, %v1284_v38  ;;  %3032 = vmatprep.subr.bf16.mxu1 %v3281_v22 }
 0x2ef   : > { %2973 = vmatprep.mubr.msk.f32.mxu0 %vm3890_vm0, %v3889_v1  ;;  %3046 = vmatpush3.bf16.msra.mxu0 %v3045_v45 }
 0x2f0   : > { %3047 = vmatprep.subr.bf16.mxu0 %v3891_v48 }
 0x2f3   : > { %3049 = vmatpush3.bf16.msra.mxu0 %v3048_v49 }
 0x2f4   : > { %3050 = vmatprep.subr.bf16.mxu0 %v3891_v48 }
 0x2f7   : > { %3052 = vmatpush3.bf16.msra.mxu0 %v3051_v52 }
 0x2f8   : > { %3053 = vmatprep.subr.bf16.mxu0 %v3891_v48 }
 0x2fb   : > { %3055 = vmatpush3.bf16.msra.mxu0 %v3054_v55 }
 0x2fc   : > { %3068 = vmatprep.subr.bf16.mxu0 %v3891_v48 }
 0x3b1   : > { %v2931_v56 = vpop.f32.mrb[8].mxu0  ;;  %v4633_v57 = vpop.f32.mrb[4].mxu1 }
 0x3b2   : > { %v1365_v58 = vpop.f32.mrb[9].mxu0  ;;  %v4635_v59 = vpop.f32.mrb[5].mxu1  ;;  %v1374_v4 = vadd.f32 %v2931_v56, %v2740_v0 }
 0x3b3   : > { %v2932_v60 = vpop.f32.mrb[10].mxu0  ;;  %v2956_v61 = vpop.f32.mrb[6].mxu1  ;;  %v1366_v5 = vadd.f32 %v2740_v0, %v1365_v58 }
 0x3b4   : > { %v1368_v62 = vpop.f32.mrb[11].mxu0  ;;  %v4637_v63 = vpop.f32.mrb[7].mxu1 }
 0x3b5   : > { %v1369_v6 = vadd.f32 %v2740_v0, %v1368_v62 }
 0x3c1   : > { %v2943_v3 = vpop.f32.mrb[12].mxu0 }
 0x3c2   : > { %v1461_v7 = vadd.f32 %v2943_v3, %v2747_v2  ;;  %v1452_v8 = vpop.f32.mrb[13].mxu0 }
 0x3c3   : > { %v1453_v9 = vadd.f32 %v2747_v2, %v1452_v8  ;;  %v2944_v10 = vpop.f32.mrb[14].mxu0 }
 0x3c4   : > { %v1563_v11 = vmul.f32 %v1461_v7, %v1366_v5  ;;  %v1677_v12 = vmul.f32 %v1461_v7, %v1369_v6  ;;  %v1791_v13 = vmul.f32 %v1461_v7, %v1374_v4  ;;  %v1455_v14 = vpop.f32.mrb[15].mxu0 }
 0x3c5   : > { %v1561_v15 = vmul.f32 %v1453_v9, %v1366_v5  ;;  %v1675_v16 = vmul.f32 %v1453_v9, %v1369_v6  ;;  %v1789_v17 = vmul.f32 %v1453_v9, %v1374_v4  ;;  %v1456_v18 = vadd.f32 %v2747_v2, %v1455_v14 }
 0x3c7   : > { %v1562_v19 = vmul.f32 %v1456_v18, %v1366_v5  ;;  %v1676_v20 = vmul.f32 %v1456_v18, %v1369_v6  ;;  %v1790_v21 = vmul.f32 %v1456_v18, %v1374_v4  ;;  %2974 = vmatmul.mubr.msk.f32.vlgmr.msra.gmra.mrb[16].mxu0 %vm1324_vm2, %v1561_v15  ;;  %2999 = vmatmul.mubr.msk.f32.vlgmr.msra.gmra.mrb[8].mxu1 %vm1324_vm2, %v1675_v16 }
 0x3c8   : > { %3070 = vmatpush3.bf16.msra.mxu0 %v3045_v45  ;;  %2976 = vmatprep.mubr.msk.f32.mxu0 %vm3890_vm0, %v3889_v1 }
 0x3c9   : > { %3001 = vmatprep.mubr.msk.f32.mxu1 %vm3890_vm0, %v3889_v1  ;;  %3071 = vmatprep.subr.bf16.mxu0 %v3891_v48 }
 0x3ca   : > { %3033 = vmatpush3.bf16.msra.mxu1 %v3281_v22 }
 0x3cb   : > { %2977 = vmatmul.mubr.msk.f32.gmra.mrb[18].mxu0 %vm1324_vm2, %v1562_v19  ;;  %3002 = vmatmul.mubr.msk.f32.gmra.mrb[10].mxu1 %vm1324_vm2, %v1676_v20  ;;  %v2754_v20 = vld [vmem:[#allocation17] ss:$0 sm:$0xff] }
 0x3cc   : > { %3073 = vmatpush3.bf16.msra.mxu0 %v3048_v49  ;;  %2979 = vmatprep.mubr.msk.f32.mxu0 %vm3890_vm0, %v3889_v1  ;;  %v1548_v22 = vadd.f32 %v4633_v57, %v2754_v20 }
 0x3cd   : > { %3004 = vmatprep.mubr.msk.f32.mxu1 %vm3890_vm0, %v3889_v1  ;;  %3074 = vmatprep.subr.bf16.mxu0 %v3891_v48 }
 0x3ce   : > { %3034 = vmatprep.subr.bf16.mxu1 %v3282_v24 }
 0x3cf   : > { %2980 = vmatmul.mubr.msk.f32.gmra.mrb[20].mxu0 %vm1324_vm2, %v1563_v11  ;;  %3005 = vmatmul.mubr.msk.f32.gmra.mrb[12].mxu1 %vm1324_vm2, %v1677_v12 }
 0x3d0   : > { %3076 = vmatpush3.bf16.msra.mxu0 %v3051_v52  ;;  %3023 = vmatprep.mubr.msk.f32.mxu0 %vm3890_vm0, %v3889_v1 }
 0x3d1   : > { %3077 = vmatprep.subr.bf16.mxu0 %v3891_v48  ;;  %3035 = vmatpush3.bf16.msra.mxu1 %v3282_v24  ;;  %v1540_v24 = vadd.f32 %v2754_v20, %v4635_v59 }
 0x3d2   : > { %3036 = vmatprep.subr.bf16.mxu1 %v3283_v25 }
 0x3d4   : > { %3079 = vmatpush3.bf16.msra.mxu0 %v3054_v55 }
 0x3d5   : > { %3037 = vmatpush3.bf16.msra.mxu1 %v3283_v25 }
 0x3d6   : > { %3038 = vmatprep.subr.bf16.mxu1 %v3284_v27 }
 0x3d7   : > { %3024 = vmatmul.mubr.msk.f32.vlgmr.msra.gmra.mrb[22].mxu0 %vm1324_vm2, %v1789_v17 }
 0x3d8   : > { %3026 = vmatprep.mubr.msk.f32.mxu0 %vm3890_vm0, %v3889_v1 }
 0x3d9   : > { %3039 = vmatpush3.bf16.msra.mxu1 %v3284_v27  ;;  %v1543_v27 = vadd.f32 %v2754_v20, %v4637_v63 }
 0x3db   : > { %3027 = vmatmul.mubr.msk.f32.gmra.mrb[24].mxu0 %vm1324_vm2, %v1790_v21 }
 0x3dc   : > { %3029 = vmatprep.mubr.msk.f32.mxu0 %vm3890_vm0, %v3889_v1 }
 0x3df   : > { %3030 = vmatmul.mubr.msk.f32.gmra.mrb[26].mxu0 %vm1324_vm2, %v1791_v13 }
 0x49a   : > { %v1639_v28 = vpop.f32.mrb[16].mxu0  ;;  %v1753_v29 = vpop.f32.mrb[8].mxu1 }
 0x49b   : > { %v2975_v30 = vpop.f32.mrb[17].mxu0  ;;  %v3000_v31 = vpop.f32.mrb[9].mxu1 }
 0x49e   : > { %v1644_v32 = vpop.f32.mrb[18].mxu0  ;;  %v1758_v1 = vpop.f32.mrb[10].mxu1 }
 0x49f   : > { %v1653_v33 = vmax.f32 %v1639_v28, %v1644_v32  ;;  %v1767_v34 = vmax.f32 %v1753_v29, %v1758_v1  ;;  %v2978_v36 = vpop.f32.mrb[19].mxu0  ;;  %v3003_v37 = vpop.f32.mrb[11].mxu1 }
 0x4a2   : > { %v1649_v38 = vpop.f32.mrb[20].mxu0  ;;  %v1763_v39 = vpop.f32.mrb[12].mxu1 }
 0x4a3   : > { %v1654_v40 = vmax.f32 %v1653_v33, %v1649_v38  ;;  %v1768_v41 = vmax.f32 %v1767_v34, %v1763_v39  ;;  %v2981_v42 = vpop.f32.mrb[21].mxu0  ;;  %v3006_v43 = vpop.f32.mrb[13].mxu1 }
 0x4a5   : > { %v1655_v44 = vsub.f32 %v1639_v28, %v1654_v40  ;;  %v1658_v45 = vsub.f32 %v1644_v32, %v1654_v40  ;;  %v1661_v46 = vsub.f32 %v1649_v38, %v1654_v40  ;;  %v1769_v47 = vsub.f32 %v1753_v29, %v1768_v41 }
 0x4a6   : > { %v1772_v48 = vsub.f32 %v1758_v1, %v1768_v41  ;;  %v1775_v49 = vsub.f32 %v1763_v39, %v1768_v41 }
 0x4a7   : > { %v1656_v50 = vmul.f32 1.442695, %v1655_v44  ;;  %v1659_v51 = vmul.f32 1.442695, %v1658_v45  ;;  %v1662_v52 = vmul.f32 1.442695, %v1661_v46 }
 0x4a8   : > { %v1770_v53 = vmul.f32 1.442695, %v1769_v47  ;;  %v1773_v54 = vmul.f32 1.442695, %v1772_v48  ;;  %v1776_v56 = vmul.f32 1.442695, %v1775_v49 }
 0x4a9   : > { %3313 = vpow2.f32 %v1656_v50 }
 0x4aa   : > { %3315 = vpow2.f32 %v1659_v51  ;;  %v1867_v55 = vpop.f32.mrb[22].mxu0 }
 0x4ab   : > { %3317 = vpow2.f32 %v1662_v52  ;;  %v3025_v58 = vpop.f32.mrb[23].mxu0 }
 0x4ac   : > { %3319 = vpow2.f32 %v1770_v53  ;;  %v2770_v58 = vld [vmem:[#allocation20] ss:$0 sm:$0xff] }
 0x4ad   : > { %3321 = vpow2.f32 %v1773_v54 }
 0x4ae   : > { %v1872_v60 = vpop.f32.mrb[24].mxu0  ;;  %3323 = vpow2.f32 %v1776_v56 }
 0x4af   : > { %v1881_v61 = vmax.f32 %v1867_v55, %v1872_v60  ;;  %v3028_v62 = vpop.f32.mrb[25].mxu0 }
 0x4b2   : > { %v1877_v0 = vpop.f32.mrb[26].mxu0 }
 0x4b3   : > { %v3314_v2 = vpop.eup %3313  ;;  %v1882_v3 = vmax.f32 %v1881_v61, %v1877_v0  ;;  %v3031_v4 = vpop.f32.mrb[27].mxu0 }
 0x4b4   : > { %v3316_v5 = vpop.eup %3315 }
 0x4b5   : > { %v3318_v6 = vpop.eup %3317  ;;  %v1664_v7 = vadd.f32 %v3316_v5, %v3314_v2  ;;  %v1883_v8 = vsub.f32 %v1867_v55, %v1882_v3  ;;  %v1886_v9 = vsub.f32 %v1872_v60, %v1882_v3  ;;  %v1889_v10 = vsub.f32 %v1877_v0, %v1882_v3 }
 0x4b6   : > { %v3320_v11 = vpop.eup %3319 }
 0x4b7   : > { %v3322_v12 = vpop.eup %3321  ;;  %v1665_v13 = vadd.f32 %v3318_v6, %v1664_v7  ;;  %v1884_v14 = vmul.f32 1.442695, %v1883_v8  ;;  %v1887_v15 = vmul.f32 1.442695, %v1886_v9  ;;  %v1890_v18 = vmul.f32 1.442695, %v1889_v10 }
 0x4b8   : > { %v1778_v16 = vadd.f32 %v3322_v12, %v3320_v11  ;;  %v3324_v17 = vpop.eup %3323 }
 0x4b9   : > { %3325 = vrcp.f32 %v1665_v13 }
 0x4ba   : > { %v1779_v19 = vadd.f32 %v3324_v17, %v1778_v16  ;;  %3327 = vpow2.f32 %v1884_v14 }
 0x4bb   : > { %3329 = vpow2.f32 %v1887_v15 }
 0x4bc   : > { %3331 = vrcp.f32 %v1779_v19 }
 0x4bd   : > { %3333 = vpow2.f32 %v1890_v18 }
 0x4c3   : > { %v3326_v21 = vpop.eup %3325 }
 0x4c4   : > { %v3328_v25 = vpop.eup %3327  ;;  %v1667_v28 = vmul.f32 %v3326_v21, %v3314_v2  ;;  %v1669_v29 = vmul.f32 %v3326_v21, %v3316_v5  ;;  %v1672_v30 = vmul.f32 %v3326_v21, %v3318_v6 }
 0x4c5   : > { %v3330_v31 = vpop.eup %3329 }
 0x4c6   : > { %v3332_v32 = vpop.eup %3331  ;;  %v1892_v1 = vadd.f32 %v3330_v31, %v3328_v25  ;;  %v1668_v33 = vmul.f32 %v1667_v28, %v1540_v24  ;;  %v1670_v34 = vmul.f32 %v1669_v29, %v1543_v27  ;;  %v1673_v36 = vmul.f32 %v1672_v30, %v1548_v22  ;;  %v3288_v28 = vld [vmem:[%s4949_s1 + $0x10] ss:$8 sps:$4 sm:$0xff]   ;;  %v3293_v29 = vld [vmem:[%s4949_s1 + $0x24] ss:$8 sps:$4 sm:$0xff]   ;;  %v3291_v30 = vld [vmem:[%s4949_s1 + $0x20] ss:$8 sps:$4 sm:$0xff]  }
 0x4c7   : > { %v3334_v37 = vpop.eup %3333  ;;  %v1781_v38 = vmul.f32 %v3332_v32, %v3320_v11  ;;  %v1783_v39 = vmul.f32 %v3332_v32, %v3322_v12  ;;  %v1786_v40 = vmul.f32 %v3332_v32, %v3324_v17  ;;  %v3294_v32 = vld [vmem:[%s4949_s1 + $0x30] ss:$8 sps:$4 sm:$0xff]  }
 0x4c8   : > { %v1893_v41 = vadd.f32 %v3334_v37, %v1892_v1  ;;  %v1671_v57 = vadd.f32 %v1670_v34, %v1668_v33  ;;  %v3892_v1 = vmov 0   ;;  %v3297_v33 = vld [vmem:[%s4950_s8 + $0x40] sm:$0xff]  }
 0x4c9   : > { %v1782_v42 = vmul.f32 %v1781_v38, %v1540_v24  ;;  %v1784_v59 = vmul.f32 %v1783_v39, %v1543_v27  ;;  %v1787_v43 = vmul.f32 %v1786_v40, %v1548_v22  ;;  %2161 = vmatprep.mubr.bf16.mxu0 %v3892_v1  ;;  %v3298_v34 = vld [vmem:[%s4950_s8] sm:$0xff]   ;;  %2875 = vmatprep.subr.bf16.mxu1 %v3297_v33  ;;  %v3301_v38 = vld [vmem:[%s4950_s8 + $0x50] sm:$0xff]   ;;  %v3303_v40 = vld [vmem:[%s4950_s8 + $0x58] sm:$0xff]  }
 0x4ca   : > { %3335 = vrcp.f32 %v1893_v41  ;;  %v1674_v63 = vadd.f32 %v1673_v36, %v1671_v57  ;;  %v3299_v36 = vld [vmem:[%s4950_s8 + $0x48] sm:$0xff]   ;;  %v3302_v39 = vld [vmem:[%s4950_s8 + $0x10] sm:$0xff]   ;;  %v3304_v41 = vld [vmem:[%s4950_s8 + $0x18] sm:$0xff]  }
 0x4cb   : > { %v1785_v44 = vadd.f32 %v1784_v59, %v1782_v42  ;;  %v3305_v57 = vld [vmem:[%s4950_s8 + $0x60] sm:$0xff]   ;;  %v3307_v59 = vld [vmem:[%s4950_s8 + $0x68] sm:$0xff]  }
 0x4cc   : > { %v3306_v42 = vld [vmem:[%s4950_s8 + $0x20] sm:$0xff]  }
 0x4cd   : > { %v1788_v45 = vadd.f32 %v1787_v43, %v1785_v44 }
 0x4cf   : > { %v1903_v46 = vpack.c.bf16 %v1788_v45, %v1674_v63 }
 0x4d1   : > { %3040 = vmatprep.mubr.msk.bf16.mxu1 %vm1324_vm2, %v1903_v46 }
 0x4d4   : > { %v3336_v47 = vpop.eup %3335 }
 0x4d5   : > { %v1895_v48 = vmul.f32 %v3336_v47, %v3328_v25  ;;  %v1897_v49 = vmul.f32 %v3336_v47, %v3330_v31  ;;  %v1900_v50 = vmul.f32 %v3336_v47, %v3334_v37  ;;  %v3285_v25 = vld [vmem:[%s4949_s1] ss:$8 sps:$4 sm:$0xff]   ;;  %v3296_v31 = vld [vmem:[%s4949_s1 + $0x34] ss:$8 sps:$4 sm:$0xff]  }
 0x4d6   : > { %v3300_v37 = vld [vmem:[%s4950_s8 + $0x8] sm:$0xff]  }
 0x4d7   : > { %v1896_v51 = vmul.f32 %v1895_v48, %v1540_v24  ;;  %v1898_v52 = vmul.f32 %v1897_v49, %v1543_v27  ;;  %v1901_v53 = vmul.f32 %v1900_v50, %v1548_v22  ;;  %v3287_v24 = vld [vmem:[%s4949_s1 + $0x4] ss:$8 sps:$4 sm:$0xff]   ;;  %v3290_v27 = vld [vmem:[%s4949_s1 + $0x14] ss:$8 sps:$4 sm:$0xff]  }
 0x4d8   : > { %2129 = vmatprep.subr.bf16.mxu0 %v3287_v24 }
 0x4d9   : > { %v1899_v54 = vadd.f32 %v1898_v52, %v1896_v51  ;;  %2130 = vmatpush1.bf16.msra.mxu0 %v3285_v25 }
 0x4da   : > { %2131 = vmatprep.subr.bf16.mxu0 %v3290_v27 }
 0x4db   : > { %v1902_v55 = vadd.f32 %v1901_v53, %v1899_v54  ;;  %v2777_v53 = vld [vmem:[#allocation22] ss:$0 sm:$0xff] }
 0x4dd   : > { %v1904_v56 = vpack.c.bf16 %v1902_v55, %v1902_v55  ;;  %2132 = vmatpush1.bf16.msra.mxu0 %v3288_v28 }
 0x4de   : > { %2133 = vmatprep.subr.bf16.mxu0 %v3293_v29 }
 0x4df   : > { %3041 = vmatmul.mubr.msk.bf16.vlgmr.msra.gmra.mrb[16].mxu1 %vm1324_vm2, %v1904_v56 }
 0x4e0   : > { %2876 = vmatpush3.bf16.msra.mxu1 %v3298_v34 }
 0x4e1   : > { %2134 = vmatpush1.bf16.msra.mxu0 %v3291_v30  ;;  %2877 = vmatprep.subr.bf16.mxu1 %v3299_v36 }
 0x4e2   : > { %2135 = vmatprep.subr.bf16.mxu0 %v3296_v31 }
 0x4e4   : > { %2878 = vmatpush3.bf16.msra.mxu1 %v3300_v37 }
 0x4e5   : > { %2136 = vmatpush1.bf16.msra.mxu0 %v3294_v32  ;;  %2879 = vmatprep.subr.bf16.mxu1 %v3301_v38 }
 0x4e8   : > { %2880 = vmatpush3.bf16.msra.mxu1 %v3302_v39 }
 0x4e9   : > { %2881 = vmatprep.subr.bf16.mxu1 %v3303_v40 }
 0x4ec   : > { %2882 = vmatpush3.bf16.msra.mxu1 %v3304_v41 }
 0x4ed   : > { %2883 = vmatprep.subr.bf16.mxu1 %v3305_v57 }
 0x4f0   : > { %2884 = vmatpush3.bf16.msra.mxu1 %v3306_v42  ;;  %v2789_v42 = vld [vmem:[%s4952_s6] ss:$0 sm:$0xff] }
 0x4f1   : > { %2885 = vmatprep.subr.bf16.mxu1 %v3307_v59 }
 0x5b2   : > { %v3042_v60 = vpop.f32.mrb[16].mxu1 }
 0x5b3   : > { %v1993_v61 = vadd.f32 %v3042_v60, %v2770_v58  ;;  %v1984_v62 = vpop.f32.mrb[17].mxu1  ;;  %v2778_v60 = vld [vmem:[#allocation23] ss:$0 sm:$0xff] }
 0x5b4   : > { %v1985_v0 = vadd.f32 %v2770_v58, %v1984_v62  ;;  %v3043_v2 = vpop.f32.mrb[18].mxu1 }
 0x5b5   : > { %v1987_v3 = vpop.f32.mrb[19].mxu1  ;;  %v2000_v4 = vadd.f32 %v1993_v61, %v4579_v35 }
 0x5b6   : > { %v1988_v5 = vadd.f32 %v2770_v58, %v1987_v3  ;;  %v1998_v6 = vadd.f32 %v1985_v0, %v4571_v23 }
 0x5b7   : > { %v2007_v7 = vsel %vm1324_vm2, %v2000_v4, 0.0 }
 0x5b8   : > { %2008 = vadd.xlane.f32.xlu1 %v2007_v7  ;;  %v2001_v8 = vsel %vm1324_vm2, %v1998_v6, 0.0  ;;  %v1999_v9 = vadd.f32 %v1988_v5, %v4573_v26  ;;  %v3308_v7 = vld [vmem:[%s4950_s8 + $0x28] sm:$0xff]  }
 0x5b9   : > { %2002 = vadd.xlane.f32.xlu0 %v2001_v8  ;;  %2886 = vmatpush3.bf16.msra.mxu1 %v3308_v7  ;;  %v3309_v8 = vld [vmem:[%s4950_s8 + $0x70] sm:$0xff]  }
 0x5ba   : > { %v2004_v10 = vsel %vm1324_vm2, %v1999_v9, 0.0  ;;  %2887 = vmatprep.subr.bf16.mxu1 %v3309_v8 }
 0x5bd   : > { %2005 = vadd.xlane.f32.xlu0 %v2004_v10  ;;  %v3311_v10 = vld [vmem:[%s4950_s8 + $0x78] sm:$0xff]  }
 0x645   : > { %v2009_v11 = vpop.xlane.xlu1 %2008 }
 0x646   : > { %v2013_v12 = vmul.f32 0.015625, %v2009_v11  ;;  %v2003_v13 = vpop.xlane.xlu0 %2002  ;;  %v3312_v11 = vld [vmem:[%s4950_s8 + $0x38] sm:$0xff]  }
 0x647   : > { %v2011_v14 = vmul.f32 0.015625, %v2003_v13 }
 0x648   : > { %v4676_v15 = vsub.f32 %v2000_v4, %v2013_v12  ;;  %v2073_v12 = vlaneseq }
 0x649   : > { %v4678_v35 = vsub.f32 %v1998_v6, %v2011_v14 }
 0x64a   : > { %v2006_v23 = vpop.xlane.xlu0 %2005  ;;  %v2019_v19 = vmul.f32 %v4676_v15, %v4676_v15  ;;  %v2074_v13 = vshrl.u32 %v2073_v12, 7 }
 0x64b   : > { %v2012_v16 = vmul.f32 0.015625, %v2006_v23  ;;  %v2017_v17 = vmul.f32 %v4678_v35, %v4678_v35 }
 0x64c   : > { %v2026_v21 = vsel %vm1324_vm2, %v2019_v19, 0.0  ;;  %v2075_v14 = vsub.s32 0, %v2074_v13 }
 0x64d   : > { %v4682_v18 = vsub.f32 %v1999_v9, %v2012_v16  ;;  %v2020_v26 = vsel %vm1324_vm2, %v2017_v17, 0.0  ;;  %v3310_v9 = vld [vmem:[%s4950_s8 + $0x30] sm:$0xff]  }
 0x64e   : > { %2021 = vadd.xlane.f32.xlu1 %v2020_v26  ;;  %2888 = vmatpush3.bf16.msra.mxu1 %v3310_v9 }
 0x64f   : > { %v2018_v20 = vmul.f32 %v4682_v18, %v4682_v18  ;;  %2889 = vmatprep.subr.bf16.mxu1 %v3311_v10 }
 0x651   : > { %v2023_v22 = vsel %vm1324_vm2, %v2018_v20, 0.0 }
 0x652   : > { %2027 = vadd.xlane.f32.xlu1 %v2026_v21  ;;  %2024 = vadd.xlane.f32.xlu0 %v2023_v22 }
 0x653   : > { %2890 = vmatpush3.bf16.msra.mxu1 %v3312_v11 }
 0x6db   : > { %v2022_v43 = vpop.xlane.xlu1 %2021 }
 0x6dc   : > { %v2029_v63 = vmul.f32 0.015625, %v2022_v43 }
 0x6de   : > { %v2032_v44 = vadd.f32 1e-05, %v2029_v63 }
 0x6df   : > { %v2028_v45 = vpop.xlane.xlu1 %2027  ;;  %v2025_v46 = vpop.xlane.xlu0 %2024 }
 0x6e0   : > { %3337 = vrsqrt.f32 %v2032_v44  ;;  %v2031_v47 = vmul.f32 0.015625, %v2028_v45  ;;  %v2030_v48 = vmul.f32 0.015625, %v2025_v46 }
 0x6e2   : > { %v2034_v49 = vadd.f32 1e-05, %v2031_v47  ;;  %v2033_v50 = vadd.f32 1e-05, %v2030_v48 }
 0x6e4   : > { %3339 = vrsqrt.f32 %v2034_v49 }
 0x6e5   : > { %3341 = vrsqrt.f32 %v2033_v50 }
 0x6ea   : > { %v3338_v51 = vpop.eup %3337 }
 0x6eb   : > { %v2038_v52 = vmul.f32 %v3338_v51, %v4678_v35  ;;  %v2079_v35 = vsub.s32 1, %v2074_v13 }
 0x6ed   : > { %v2048_v56 = vmul.f32 %v2777_v53, %v2038_v52 }
 0x6ee   : > { %v3340_v54 = vpop.eup %3339 }
 0x6ef   : > { %v3342_v55 = vpop.eup %3341  ;;  %v2040_v61 = vmul.f32 %v3340_v54, %v4676_v15  ;;  %v4751_v0 = vadd.f32 %v2778_v60, %v2048_v56  ;;  %v2071_v15 = vld [vmem:[%s4951_s26] sm:$0x3] }
 0x6f0   : > { %v2039_v58 = vmul.f32 %v3342_v55, %v4682_v18  ;;  %v2076_v23 = vrot.slane %v2071_v15, %v2075_v14  ;;  %v2080_v16 = vrot.slane %v2071_v15, %v2079_v35 }
 0x6f1   : > { %v2050_v4 = vmul.f32 %v2777_v53, %v2040_v61 }
 0x6f2   : > { %v2049_v62 = vmul.f32 %v2777_v53, %v2039_v58 }
 0x6f3   : > { %v4758_v5 = vadd.f32 %v2778_v60, %v2050_v4 }
 0x6f4   : > { %v4753_v2 = vadd.f32 %v2778_v60, %v2049_v62 }
 0x6f5   : > { %v2062_v6 = vpack.c.bf16 %v4758_v5, %v4758_v5 }
 0x6f6   : > { %v2061_v3 = vpack.c.bf16 %v4753_v2, %v4751_v0 }
 0x6f8   : > { %2787 = vmatmul.mubr.msk.bf16.vlgmr.msra.gmra.mrb[28].mxu0 %vm1324_vm2, %v2061_v3 }
 0x6f9   : > { %2171 = vmatprep.mubr.bf16.mxu0 %v3892_v1 }
 0x700   : > { %2788 = vmatmul.mubr.msk.bf16.gmra.mrb[32].mxu0 %vm1324_vm2, %v2062_v6 }
 0x7cb   : > { %v2163_v17 = vpop.f32.mrb[28].mxu0 }
 0x7cc   : > { %v2164_v18 = vadd.f32 %v2163_v17, %v2076_v23  ;;  %v2165_v26 = vpop.f32.mrb[29].mxu0 }
 0x7cd   : > { %v2166_v19 = vadd.f32 %v2165_v26, %v2080_v16  ;;  %v2167_v20 = vpop.f32.mrb[30].mxu0 }
 0x7ce   : > { %v2168_v21 = vadd.f32 %v2167_v20, %v2076_v23  ;;  %v2169_v22 = vpop.f32.mrb[31].mxu0  ;;  %v2180_v25 = vmax.f32 %v2164_v18, 0.0 }
 0x7cf   : > { %v2170_v24 = vadd.f32 %v2169_v22, %v2080_v16  ;;  %v2181_v28 = vmax.f32 %v2166_v19, 0.0 }
 0x7d0   : > { %v2182_v27 = vmax.f32 %v2168_v21, 0.0 }
 0x7d1   : > { %v2183_v29 = vmax.f32 %v2170_v24, 0.0 }
 0x7d2   : > { %v2186_v30 = vpack.c.bf16 %v2182_v27, %v2180_v25  ;;  %v2806_v27 = vld [vmem:[#allocation25] ss:$0 sm:$0xff] }
 0x7d3   : > { %v2187_v31 = vpack.c.bf16 %v2183_v29, %v2181_v28  ;;  %v2173_v32 = vpop.f32.mrb[32].mxu0 }
 0x7d4   : > { %v2174_v1 = vadd.f32 %v2173_v32, %v2076_v23  ;;  %v2175_v33 = vpop.f32.mrb[33].mxu0 }
 0x7d5   : > { %v2176_v34 = vadd.f32 %v2175_v33, %v2080_v16  ;;  %v2177_v36 = vpop.f32.mrb[34].mxu0  ;;  %2357 = vmatprep.mubr.bf16.mxu1 %v2187_v31  ;;  %v2807_v31 = vld [vmem:[#allocation26] ss:$0 sm:$0xff] }
 0x7d6   : > { %v2178_v37 = vpop.f32.mrb[35].mxu0  ;;  %2358 = vmatmul.mubr.bf16.vlgmr.msra.gmra.mrb[20].mxu1 %v2186_v30  ;;  %v2184_v39 = vmax.f32 %v2174_v1, 0.0 }
 0x7d7   : > { %v2185_v38 = vmax.f32 %v2176_v34, 0.0 }
 0x7d8   : > { %v2188_v41 = vpack.c.bf16 %v2184_v39, %v2184_v39  ;;  %v2808_v39 = vld [vmem:[%s4953_s16] ss:$0 sm:$0xff] }
 0x7d9   : > { %v2189_v40 = vpack.c.bf16 %v2185_v38, %v2185_v38 }
 0x7db   : > { %2365 = vmatprep.mubr.bf16.mxu1 %v2189_v40 }
 0x7de   : > { %2366 = vmatmul.mubr.bf16.gmra.mrb[24].mxu1 %v2188_v41 }
 0x8a9   : > { %v2891_v57 = vpop.f32.mrb[20].mxu1 }
 0x8aa   : > { %v2892_v59 = vpop.f32.mrb[21].mxu1 }
 0x8ab   : > { %v2893_v43 = vadd.f32 %v2892_v59, %v2891_v57  ;;  %v2894_v63 = vpop.f32.mrb[22].mxu1 }
 0x8ac   : > { %v2895_v44 = vpop.f32.mrb[23].mxu1 }
 0x8ad   : > { %v2360_v45 = vadd.f32 %v2893_v43, %v2789_v42  ;;  %v2896_v46 = vadd.f32 %v2895_v44, %v2894_v63 }
 0x8af   : > { %v2363_v47 = vadd.f32 %v2896_v46, %v2789_v42  ;;  %v2373_v48 = vadd.f32 %v2360_v45, %v4751_v0 }
 0x8b1   : > { %v2897_v49 = vpop.f32.mrb[24].mxu1  ;;  %v2376_v50 = vsel %vm1324_vm2, %v2373_v48, 0.0  ;;  %v2374_v51 = vadd.f32 %v2363_v47, %v4753_v2 }
 0x8b2   : > { %v2898_v52 = vpop.f32.mrb[25].mxu1  ;;  %2377 = vadd.xlane.f32.xlu0 %v2376_v50 }
 0x8b3   : > { %v2899_v53 = vadd.f32 %v2898_v52, %v2897_v49  ;;  %v2900_v54 = vpop.f32.mrb[26].mxu1  ;;  %v2379_v55 = vsel %vm1324_vm2, %v2374_v51, 0.0 }
 0x8b4   : > { %v2901_v56 = vpop.f32.mrb[27].mxu1  ;;  %2380 = vadd.xlane.f32.xlu1 %v2379_v55 }
 0x8b5   : > { %v2368_v58 = vadd.f32 %v2899_v53, %v2789_v42  ;;  %v2809_v42 = vld [vmem:[#allocation2] ss:$0 sm:$0xff] }
 0x8b7   : > { %v2375_v60 = vadd.f32 %v2368_v58, %v4758_v5 }
 0x8b9   : > { %v2382_v61 = vsel %vm1324_vm2, %v2375_v60, 0.0 }
 0x8ba   : > { %2383 = vadd.xlane.f32.xlu0 %v2382_v61 }
 0x93f   : > { %v2378_v62 = vpop.xlane.xlu0 %2377 }
 0x940   : > { %v2385_v0 = vmul.f32 0.015625, %v2378_v62 }
 0x941   : > { %v2381_v3 = vpop.xlane.xlu1 %2380 }
 0x942   : > { %v2388_v4 = vsub.f32 %v2373_v48, %v2385_v0  ;;  %v2386_v6 = vmul.f32 0.015625, %v2381_v3 }
 0x944   : > { %v2389_v2 = vsub.f32 %v2374_v51, %v2386_v6  ;;  %v2391_v7 = vmul.f32 %v2388_v4, %v2388_v4 }
 0x946   : > { %v2394_v8 = vsel %vm1324_vm2, %v2391_v7, 0.0  ;;  %v2392_v9 = vmul.f32 %v2389_v2, %v2389_v2 }
 0x947   : > { %2395 = vadd.xlane.f32.xlu1 %v2394_v8  ;;  %v2384_v10 = vpop.xlane.xlu0 %2383 }
 0x948   : > { %v2387_v11 = vmul.f32 0.015625, %v2384_v10  ;;  %v2397_v12 = vsel %vm1324_vm2, %v2392_v9, 0.0 }
 0x949   : > { %2398 = vadd.xlane.f32.xlu0 %v2397_v12 }
 0x94a   : > { %v2390_v5 = vsub.f32 %v2375_v60, %v2387_v11 }
 0x94c   : > { %v2393_v13 = vmul.f32 %v2390_v5, %v2390_v5 }
 0x94e   : > { %v2400_v14 = vsel %vm1324_vm2, %v2393_v13, 0.0 }
 0x94f   : > { %2401 = vadd.xlane.f32.xlu1 %v2400_v14 }
 0x9d4   : > { %v2396_v15 = vpop.xlane.xlu1 %2395 }
 0x9d5   : > { %v2403_v35 = vmul.f32 0.015625, %v2396_v15 }
 0x9d6   : > { %v2399_v23 = vpop.xlane.xlu0 %2398 }
 0x9d7   : > { %v2406_v16 = vadd.f32 1e-05, %v2403_v35  ;;  %v2404_v17 = vmul.f32 0.015625, %v2399_v23 }
 0x9d9   : > { %3343 = vrsqrt.f32 %v2406_v16  ;;  %v2407_v18 = vadd.f32 1e-05, %v2404_v17 }
 0x9db   : > { %3345 = vrsqrt.f32 %v2407_v18 }
 0x9dc   : > { %v2402_v26 = vpop.xlane.xlu1 %2401 }
 0x9dd   : > { %v2405_v19 = vmul.f32 0.015625, %v2402_v26 }
 0x9df   : > { %v2408_v20 = vadd.f32 1e-05, %v2405_v19 }
 0x9e1   : > { %3347 = vrsqrt.f32 %v2408_v20 }
 0x9e3   : > { %v3344_v21 = vpop.eup %3343 }
 0x9e4   : > { %v2412_v24 = vmul.f32 %v3344_v21, %v2388_v4 }
 0x9e5   : > { %v3346_v22 = vpop.eup %3345 }
 0x9e6   : > { %v2413_v25 = vmul.f32 %v3346_v22, %v2389_v2  ;;  %v2422_v29 = vmul.f32 %v2806_v27, %v2412_v24 }
 0x9e8   : > { %v2423_v28 = vmul.f32 %v2806_v27, %v2413_v25  ;;  %v2432_v34 = vadd.f32 %v2807_v31, %v2422_v29 }
 0x9ea   : > { %v2433_v1 = vadd.f32 %v2807_v31, %v2423_v28 }
 0x9eb   : > { %v3348_v30 = vpop.eup %3347 }
 0x9ec   : > { %v2414_v32 = vmul.f32 %v3348_v30, %v2390_v5  ;;  %v2435_v37 = vadd.f32 %v2433_v1, %v2432_v34 }
 0x9ee   : > { %v2424_v33 = vmul.f32 %v2806_v27, %v2414_v32 }
 0x9f0   : > { %v2434_v36 = vadd.f32 %v2807_v31, %v2424_v33 }
 0x9f2   : > { %v2436_v38 = vadd.f32 %v2435_v37, %v2434_v36 }
 0x9f4   : > { %v2437_v40 = vmul.f32 0.33333334, %v2436_v38 }
 0x9f6   : > { %v2445_v41 = vmul.f32 %v2808_v39, %v2437_v40 }
 0x9f8   : > { %v2446_v57 = vsel %vm1324_vm2, %v2445_v41, 0.0 }
 0x9f9   : > { %2447 = vadd.xlane.f32.xlu0 %v2446_v57 }
 0xa86   : > { %v2448_v59 = vpop.xlane.xlu0 %2447 }
 0xa87   : > { %v2456_v43 = vadd.f32 %v2809_v42, %v2448_v59 }
 0xa89   : > { %2458 = vst.msk [vmem:[%s1100_s10] sm:$0xff] %vm2457_vm3, %v2456_v43 }
 0xa8a PF: > { %s4955_s6 = sld [smem:[#allocation37_spill]]  ;;  %s4956_s5 = sld [smem:[#allocation38_spill]] }
 0xa8b   : > { %s4957_s9 = smov %s3861_s30  ;;  %s4958_s30 = smov %s3865_s3 }
 0xa90   : > { %p50_p10 = scmp.ge.s32.totalorder %s4955_s6, 4   ;;  %s4959_s3 = smov %s4956_s5 }
 0xa92   :  { %52 = sbr.rel (!%p50_p10) target bundleno = 36 (0x24), region = 248 }
 0xa99   :  { %2478 = vsyncpa [#allocation4], 1 }
 0xa9a   :  { %2480 = vsyncpa [#allocation4 + $0x1], 1 }
 0xa9b   :  { %2481 = vsyncpa [#allocation6], 1 }
 0xa9c   :  { %2483 = vsyncpa [#allocation6 + $0x1], 1 }
 0xa9d   :  { %2484 = vsyncpa [#allocation9], 1 }
 0xa9e   :  { %2485 = vsyncpa [#allocation12], 1 }
 0xa9f   :  { %2486 = vsyncpa [#allocation15], 1 }
 0xaa0   :  { %2487 = vsyncpa [#allocation18], 1 }
 0xaa1   :  { %2488 = vsyncpa [#allocation21], 1 }
 0xaa2   :  { %2489 = vsyncpa [#allocation24], 1 }
 0xaa3   :  { %2490 = vsyncpa [#allocation27], 1 }

</bundles_post_ra>
